<compile_context>
chip_gen: v6e
topology: v6e:2x2x1
jax: 0.10.0
libtpu: 0.0.40
codegen_flags: <defaults>
</compile_context>

<pallas_src>
import jax
import jax.numpy as jnp
from jax import lax
from jax.experimental import pallas as pl
from jax.experimental.pallas import tpu as pltpu

# ---------------- config ----------------
VOCAB = 50
EMBED = 16
HIDDEN = 32
BIDIRECTIONAL = True
CLASS_NUM = 5
B = 2                       # batch
T = 8                       # sequence length
D = HIDDEN * (2 if BIDIRECTIONAL else 1)   # attention / fc hidden dim
GH = 2 * HIDDEN             # per-gate block width: [fwd | bwd]
GATES = 4 * GH              # fused gate width (i|f|g|o blocks) = 256


# ---------------- Pallas kernel ----------------
def rnn_att_kernel(
    tok_ref,                    # (T*B, 1) int32  tokens, time-major flattened
    projf_ref, projb_ref,       # (VOCAB, GATES)  projected embedding tables
    whh_ref,                    # (GH, GATES)     block-diagonal recurrent W
    attwf_ref, attwb_ref,       # (1, H) each     attention vector halves
    fcwf_ref, fcwb_ref,         # (H, C) each     fc weight halves
    fcb_ref,                    # (1, C)
    out_ref,                    # (B, C)          logits
    seqf_scr, seqb_scr,         # (T, B, H)       per-direction LSTM outputs
):
    H = HIDDEN

    # ---- fused embedding gather + input projection (one-hot MXU gather) ----
    # gates_x[n] = proj_table[token[n]]; biases are already folded in.
    tok = tok_ref[...]                                        # (T*B, 1)
    vocab_iota = lax.broadcasted_iota(jnp.int32, (T * B, VOCAB), 1)
    onehot = (tok == vocab_iota).astype(jnp.float32)          # (T*B, VOCAB)
    gxf = jnp.dot(onehot, projf_ref[...],
                  preferred_element_type=jnp.float32)         # (T*B, GATES)
    gxb = jnp.dot(onehot, projb_ref[...],
                  preferred_element_type=jnp.float32)         # (T*B, GATES)

    whh = whh_ref[...]                                        # (GH, GATES)

    # Hoisted lane mask selecting the tanh (g) gate block: columns [2GH, 3GH).
    lane = lax.broadcasted_iota(jnp.int32, (B, GATES), 1)
    g_mask = (lane >= 2 * GH) & (lane < 3 * GH)

    h_cat = jnp.zeros((B, GH), jnp.float32)                   # [h_f | h_b]
    c_cat = jnp.zeros((B, GH), jnp.float32)                   # [c_f | c_b]

    # ---- merged fwd+bwd recurrence, fully unrolled (T static & small) ----
    # At step s the fwd direction consumes time s, the bwd direction time
    # T-1-s; they are data independent so one fused gate matmul serves both.
    for s in range(T):
        rec = jnp.dot(h_cat, whh,
                      preferred_element_type=jnp.float32)     # (B, GATES)
        gates = (rec
                 + gxf[s * B:(s + 1) * B, :]
                 + gxb[(T - 1 - s) * B:(T - s) * B, :])
        act = jnp.where(g_mask, jnp.tanh(gates), jax.nn.sigmoid(gates))
        i_g = act[:, 0 * GH:1 * GH]
        f_g = act[:, 1 * GH:2 * GH]
        g_g = act[:, 2 * GH:3 * GH]
        o_g = act[:, 3 * GH:4 * GH]
        c_cat = f_g * c_cat + i_g * g_g
        h_cat = o_g * jnp.tanh(c_cat)
        seqf_scr[s] = h_cat[:, 0:H]                 # fwd output at time s
        seqb_scr[T - 1 - s] = h_cat[:, H:2 * H]     # bwd output at time T-1-s

    # ---- attention + classifier (split per direction half; no concat) ----
    xf = jnp.tanh(seqf_scr[...])                              # (T, B, H)
    xb = jnp.tanh(seqb_scr[...])                              # (T, B, H)
    wf = attwf_ref[...].reshape(1, 1, H)
    wb = attwb_ref[...].reshape(1, 1, H)
    scores = (jnp.sum(xf * wf, axis=-1, keepdims=True)
              + jnp.sum(xb * wb, axis=-1, keepdims=True))     # (T, B, 1)
    m = jnp.max(scores, axis=0, keepdims=True)
    e = jnp.exp(scores - m)
    alpha = e / jnp.sum(e, axis=0, keepdims=True)             # softmax over T
    pooled_f = jnp.maximum(jnp.sum(xf * alpha, axis=0), 0.0)  # (B, H)  relu
    pooled_b = jnp.maximum(jnp.sum(xb * alpha, axis=0), 0.0)  # (B, H)
    logits = (jnp.dot(pooled_f, fcwf_ref[...], preferred_element_type=jnp.float32)
              + jnp.dot(pooled_b, fcwb_ref[...], preferred_element_type=jnp.float32)
              + fcb_ref[...])                                 # (B, C)
    out_ref[...] = logits


# ---------------- wrapper ----------------
@jax.jit
def rnn_att_forward(tokens, params):
    # Only per-call XLA work: reorder the 16 int32 token ids to time-major.
    tok_tb = jnp.transpose(tokens).reshape(T * B, 1).astype(jnp.int32)

    vmem_spec = pl.BlockSpec(memory_space=pltpu.MemorySpace.VMEM)

    out = pl.pallas_call(
        rnn_att_kernel,
        out_shape=jax.ShapeDtypeStruct((B, CLASS_NUM), jnp.float32),
        in_specs=[vmem_spec] * 9,
        out_specs=vmem_spec,
        scratch_shapes=[
            pltpu.VMEM((T, B, HIDDEN), jnp.float32),   # forward outputs
            pltpu.VMEM((T, B, HIDDEN), jnp.float32),   # backward outputs
        ],
    )(
        tok_tb,
        params["projF"], params["projB"], params["whh_blk"],
        params["attW_f"], params["attW_b"],
        params["fcw_f"], params["fcw_b"], params["fcb"],
    )
    return out


# ---------------- parameter init (kernel layouts built once here) ----------------
def _scatter_gate_cols(mat4h, direction):
    """(rows, 4H) in PyTorch [i|f|g|o] order -> (rows, GATES) gate-grouped.

    Each gate block is 2H wide = [fwd | bwd]; `direction` 0 fills the fwd
    half, 1 fills the bwd half; the other half stays zero.
    """
    rows = mat4h.shape[0]
    out = jnp.zeros((rows, GATES), jnp.float32)
    for gi in range(4):
        c0 = gi * GH + direction * HIDDEN
        out = out.at[:, c0:c0 + HIDDEN].set(
            mat4h[:, gi * HIDDEN:(gi + 1) * HIDDEN])
    return out


def init_params(key):
    keys = jax.random.split(key, 12)
    k = 1.0 / jnp.sqrt(jnp.float32(HIDDEN))
    kf = 1.0 / jnp.sqrt(jnp.float32(D))

    embedding = jax.random.normal(keys[0], (VOCAB, EMBED), jnp.float32)

    def u(kk, shape, bound):
        return jax.random.uniform(kk, shape, jnp.float32, -bound, bound)

    # PyTorch LSTM parameter shapes: weight_ih (4H,E), weight_hh (4H,H), biases (4H,)
    w_ih_f = u(keys[1], (4 * HIDDEN, EMBED), k)
    w_hh_f = u(keys[2], (4 * HIDDEN, HIDDEN), k)
    b_ih_f = u(keys[3], (4 * HIDDEN,), k)
    b_hh_f = u(keys[4], (4 * HIDDEN,), k)
    w_ih_b = u(keys[5], (4 * HIDDEN, EMBED), k)
    w_hh_b = u(keys[6], (4 * HIDDEN, HIDDEN), k)
    b_ih_b = u(keys[7], (4 * HIDDEN,), k)
    b_hh_b = u(keys[8], (4 * HIDDEN,), k)

    attW = jax.random.normal(keys[9], (D,), jnp.float32)     # torch.randn(hidden_dim)
    fc_w = u(keys[10], (CLASS_NUM, D), kf)
    fc_b = u(keys[11], (CLASS_NUM,), kf)

    # ---- kernel-layout params (built once) ----
    # Projected embedding tables: embedding @ W_ih^T + (b_ih + b_hh), gate-grouped.
    projF = _scatter_gate_cols(embedding @ w_ih_f.T + b_ih_f + b_hh_f, 0)
    projB = _scatter_gate_cols(embedding @ w_ih_b.T + b_ih_b + b_hh_b, 1)
    # Block-diagonal recurrent weights: rows [0:H] act on h_f, [H:2H] on h_b.
    whh_blk = jnp.concatenate([_scatter_gate_cols(w_hh_f.T, 0),
                               _scatter_gate_cols(w_hh_b.T, 1)], axis=0)
    fcw_T = fc_w.T                                            # (D, C)

    params = {
        # raw (PyTorch-layout) params, used by the pure-JAX reference
        "embedding": embedding,
        "w_ih_f": w_ih_f, "w_hh_f": w_hh_f, "b_ih_f": b_ih_f, "b_hh_f": b_hh_f,
        "w_ih_b": w_ih_b, "w_hh_b": w_hh_b, "b_ih_b": b_ih_b, "b_hh_b": b_hh_b,
        "attW_vec": attW, "fc_w": fc_w, "fc_b_vec": fc_b,
        # kernel-layout params
        "projF": projF, "projB": projB, "whh_blk": whh_blk,
        "attW_f": attW[:HIDDEN].reshape(1, HIDDEN),
        "attW_b": attW[HIDDEN:].reshape(1, HIDDEN),
        "fcw_f": fcw_T[:HIDDEN, :], "fcw_b": fcw_T[HIDDEN:, :],
        "fcb": fc_b.reshape(1, CLASS_NUM),
    }
    return params


# ---------------- pure-JAX reference (for correctness check) ----------------
def reference_forward(tokens, p):
    emb = p["embedding"][tokens]                          # (B,T,E)

    def run_dir(wih, whh, bih, bhh, reverse):
        xs = jnp.transpose(emb, (1, 0, 2))                # (T,B,E)
        if reverse:
            xs = xs[::-1]

        def step(carry, x_t):
            h, c = carry
            gates = x_t @ wih.T + h @ whh.T + bih + bhh
            i_g, f_g, g_g, o_g = jnp.split(gates, 4, axis=-1)
            i_g = jax.nn.sigmoid(i_g)
            f_g = jax.nn.sigmoid(f_g)
            g_g = jnp.tanh(g_g)
            o_g = jax.nn.sigmoid(o_g)
            c_new = f_g * c + i_g * g_g
            h_new = o_g * jnp.tanh(c_new)
            return (h_new, c_new), h_new

        h0 = jnp.zeros((B, HIDDEN), jnp.float32)
        _, outs = lax.scan(step, (h0, h0), xs)            # (T,B,H)
        if reverse:
            outs = outs[::-1]
        return jnp.transpose(outs, (1, 0, 2))             # (B,T,H)

    out_f = run_dir(p["w_ih_f"], p["w_hh_f"], p["b_ih_f"], p["b_hh_f"], False)
    out_b = run_dir(p["w_ih_b"], p["w_hh_b"], p["b_ih_b"], p["b_hh_b"], True)
    out = jnp.concatenate([out_f, out_b], axis=-1)        # (B,T,D)

    x = jnp.tanh(out)
    alpha = jax.nn.softmax(x @ p["attW_vec"], axis=1)[..., None]   # (B,T,1)
    pooled = jnp.sum(x * alpha, axis=1)                   # (B,D)
    pooled = jnp.maximum(pooled, 0.0)
    return pooled @ p["fc_w"].T + p["fc_b_vec"]           # (B,C)


if __name__ == "__main__":
    key = jax.random.PRNGKey(0)
    pkey, xkey = jax.random.split(key)
    params = init_params(pkey)
    tokens = jax.random.randint(xkey, (B, T), 0, VOCAB, dtype=jnp.int32)

    logits = rnn_att_forward(tokens, params)
    logits = jax.block_until_ready(logits)

    ref = reference_forward(tokens, params)
    assert logits.shape == (B, CLASS_NUM)
    assert jnp.allclose(logits, ref, rtol=2e-3, atol=2e-3), (
        f"mismatch: pallas={logits}, ref={ref}")

    print("KERNEL_OK")
</pallas_src>

<mosaic_0001>
module attributes {stable_mosaic.version = 11 : i64} {
  func.func @rnn_att_kernel(%arg0: memref<16x1xi32, #tpu.memory_space<vmem>>, %arg1: memref<50x256xf32, #tpu.memory_space<vmem>>, %arg2: memref<50x256xf32, #tpu.memory_space<vmem>>, %arg3: memref<64x256xf32, #tpu.memory_space<vmem>>, %arg4: memref<1x32xf32, #tpu.memory_space<vmem>>, %arg5: memref<1x32xf32, #tpu.memory_space<vmem>>, %arg6: memref<32x5xf32, #tpu.memory_space<vmem>>, %arg7: memref<32x5xf32, #tpu.memory_space<vmem>>, %arg8: memref<1x5xf32, #tpu.memory_space<vmem>>, %arg9: memref<2x5xf32, #tpu.memory_space<vmem>>, %arg10: memref<8x2x32xf32, #tpu.memory_space<vmem>>, %arg11: memref<8x2x32xf32, #tpu.memory_space<vmem>>) attributes {dimension_semantics = [], scalar_prefetch = 0 : i64, scratch_operands = 2 : i64, tpu.core_type = #tpu.core_type<tc>} {
    %c0 = arith.constant 0 : index
    %c0_0 = arith.constant 0 : index
    %0 = vector.load %arg0[%c0, %c0_0] : memref<16x1xi32, #tpu.memory_space<vmem>>, vector<16x1xi32>
    %1 = tpu.iota {dimensions = array<i32: 1>} : vector<16x50xi32>
    %2 = vector.broadcast %0 : vector<16x1xi32> to vector<16x50xi32>
    %3 = arith.cmpi eq, %2, %1 : vector<16x50xi32>
    %4 = arith.extui %3 : vector<16x50xi1> to vector<16x50xi32>
    %5 = arith.sitofp %4 : vector<16x50xi32> to vector<16x50xf32>
    %c0_1 = arith.constant 0 : index
    %c0_2 = arith.constant 0 : index
    %6 = vector.load %arg1[%c0_1, %c0_2] : memref<50x256xf32, #tpu.memory_space<vmem>>, vector<50x256xf32>
    %cst = arith.constant dense<0.000000e+00> : vector<16x256xf32>
    %7 = tpu.matmul %5, %6, %cst {dimension_numbers = #tpu.dot_dimension_numbers<[1], [0], [0], [1], [0, 0, 1, 1], [], []>} : vector<16x50xf32>, vector<50x256xf32>, vector<16x256xf32> -> vector<16x256xf32>
    %c0_3 = arith.constant 0 : index
    %c0_4 = arith.constant 0 : index
    %8 = vector.load %arg2[%c0_3, %c0_4] : memref<50x256xf32, #tpu.memory_space<vmem>>, vector<50x256xf32>
    %cst_5 = arith.constant dense<0.000000e+00> : vector<16x256xf32>
    %9 = tpu.matmul %5, %8, %cst_5 {dimension_numbers = #tpu.dot_dimension_numbers<[1], [0], [0], [1], [0, 0, 1, 1], [], []>} : vector<16x50xf32>, vector<50x256xf32>, vector<16x256xf32> -> vector<16x256xf32>
    %c0_6 = arith.constant 0 : index
    %c0_7 = arith.constant 0 : index
    %10 = vector.load %arg3[%c0_6, %c0_7] : memref<64x256xf32, #tpu.memory_space<vmem>>, vector<64x256xf32>
    %11 = tpu.iota {dimensions = array<i32: 1>} : vector<2x256xi32>
    %c128_i32 = arith.constant 128 : i32
    %12 = vector.broadcast %c128_i32 : i32 to vector<2x256xi32>
    %13 = arith.cmpi sge, %11, %12 : vector<2x256xi32>
    %c192_i32 = arith.constant 192 : i32
    %14 = vector.broadcast %c192_i32 : i32 to vector<2x256xi32>
    %15 = arith.cmpi slt, %11, %14 : vector<2x256xi32>
    %16 = arith.andi %13, %15 : vector<2x256xi1>
    %cst_8 = arith.constant 0.000000e+00 : f32
    %17 = vector.broadcast %cst_8 : f32 to vector<2x64xf32>
    %cst_9 = arith.constant 0.000000e+00 : f32
    %18 = vector.broadcast %cst_9 : f32 to vector<2x64xf32>
    %cst_10 = arith.constant dense<0.000000e+00> : vector<2x256xf32>
    %19 = tpu.matmul %17, %10, %cst_10 {dimension_numbers = #tpu.dot_dimension_numbers<[1], [0], [0], [1], [0, 0, 1, 1], [], []>} : vector<2x64xf32>, vector<64x256xf32>, vector<2x256xf32> -> vector<2x256xf32>
    %20 = vector.extract_strided_slice %7 {offsets = [0, 0], sizes = [2, 256], strides = [1, 1]} : vector<16x256xf32> to vector<2x256xf32>
    %21 = arith.addf %19, %20 : vector<2x256xf32>
    %22 = vector.extract_strided_slice %9 {offsets = [14, 0], sizes = [2, 256], strides = [1, 1]} : vector<16x256xf32> to vector<2x256xf32>
    %23 = arith.addf %21, %22 : vector<2x256xf32>
    %24 = math.tanh %23 : vector<2x256xf32>
    %25 = arith.negf %23 : vector<2x256xf32>
    %26 = math.exp %25 : vector<2x256xf32>
    %cst_11 = arith.constant 1.000000e+00 : f32
    %27 = vector.broadcast %cst_11 : f32 to vector<2x256xf32>
    %28 = arith.addf %27, %26 : vector<2x256xf32>
    %29 = arith.divf %27, %28 : vector<2x256xf32>
    %30 = arith.select %16, %24, %29 : vector<2x256xi1>, vector<2x256xf32>
    %31 = vector.extract_strided_slice %30 {offsets = [0, 0], sizes = [2, 64], strides = [1, 1]} : vector<2x256xf32> to vector<2x64xf32>
    %32 = vector.extract_strided_slice %30 {offsets = [0, 64], sizes = [2, 64], strides = [1, 1]} : vector<2x256xf32> to vector<2x64xf32>
    %33 = vector.extract_strided_slice %30 {offsets = [0, 128], sizes = [2, 64], strides = [1, 1]} : vector<2x256xf32> to vector<2x64xf32>
    %34 = vector.extract_strided_slice %30 {offsets = [0, 192], sizes = [2, 64], strides = [1, 1]} : vector<2x256xf32> to vector<2x64xf32>
    %35 = arith.mulf %32, %18 : vector<2x64xf32>
    %36 = arith.mulf %31, %33 : vector<2x64xf32>
    %37 = arith.addf %35, %36 : vector<2x64xf32>
    %38 = math.tanh %37 : vector<2x64xf32>
    %39 = arith.mulf %34, %38 : vector<2x64xf32>
    %40 = vector.extract_strided_slice %39 {offsets = [0, 0], sizes = [2, 32], strides = [1, 1]} : vector<2x64xf32> to vector<2x32xf32>
    %c0_12 = arith.constant 0 : index
    %c0_13 = arith.constant 0 : index
    %c0_14 = arith.constant 0 : index
    %41 = vector.load %arg10[%c0_12, %c0_13, %c0_14] : memref<8x2x32xf32, #tpu.memory_space<vmem>>, vector<1x2x32xf32>
    %42 = vector.shape_cast %41 : vector<1x2x32xf32> to vector<2x32xf32>
    %43 = vector.shape_cast %40 : vector<2x32xf32> to vector<1x2x32xf32>
    tpu.vector_store %arg10[%c0_12, %c0_13, %c0_14], %43 {strides = array<i32>} : memref<8x2x32xf32, #tpu.memory_space<vmem>>, vector<1x2x32xf32>,
    %44 = vector.extract_strided_slice %39 {offsets = [0, 32], sizes = [2, 32], strides = [1, 1]} : vector<2x64xf32> to vector<2x32xf32>
    %c7 = arith.constant 7 : index
    %c0_15 = arith.constant 0 : index
    %c0_16 = arith.constant 0 : index
    %45 = vector.load %arg11[%c7, %c0_15, %c0_16] : memref<8x2x32xf32, #tpu.memory_space<vmem>>, vector<1x2x32xf32>
    %46 = vector.shape_cast %45 : vector<1x2x32xf32> to vector<2x32xf32>
    %47 = vector.shape_cast %44 : vector<2x32xf32> to vector<1x2x32xf32>
    tpu.vector_store %arg11[%c7, %c0_15, %c0_16], %47 {strides = array<i32>} : memref<8x2x32xf32, #tpu.memory_space<vmem>>, vector<1x2x32xf32>,
    %cst_17 = arith.constant dense<0.000000e+00> : vector<2x256xf32>
    %48 = tpu.matmul %39, %10, %cst_17 {dimension_numbers = #tpu.dot_dimension_numbers<[1], [0], [0], [1], [0, 0, 1, 1], [], []>} : vector<2x64xf32>, vector<64x256xf32>, vector<2x256xf32> -> vector<2x256xf32>
    %49 = vector.extract_strided_slice %7 {offsets = [2, 0], sizes = [2, 256], strides = [1, 1]} : vector<16x256xf32> to vector<2x256xf32>
    %50 = arith.addf %48, %49 : vector<2x256xf32>
    %51 = vector.extract_strided_slice %9 {offsets = [12, 0], sizes = [2, 256], strides = [1, 1]} : vector<16x256xf32> to vector<2x256xf32>
    %52 = arith.addf %50, %51 : vector<2x256xf32>
    %53 = math.tanh %52 : vector<2x256xf32>
    %54 = arith.negf %52 : vector<2x256xf32>
    %55 = math.exp %54 : vector<2x256xf32>
    %cst_18 = arith.constant 1.000000e+00 : f32
    %56 = vector.broadcast %cst_18 : f32 to vector<2x256xf32>
    %57 = arith.addf %56, %55 : vector<2x256xf32>
    %58 = arith.divf %56, %57 : vector<2x256xf32>
    %59 = arith.select %16, %53, %58 : vector<2x256xi1>, vector<2x256xf32>
    %60 = vector.extract_strided_slice %59 {offsets = [0, 0], sizes = [2, 64], strides = [1, 1]} : vector<2x256xf32> to vector<2x64xf32>
    %61 = vector.extract_strided_slice %59 {offsets = [0, 64], sizes = [2, 64], strides = [1, 1]} : vector<2x256xf32> to vector<2x64xf32>
    %62 = vector.extract_strided_slice %59 {offsets = [0, 128], sizes = [2, 64], strides = [1, 1]} : vector<2x256xf32> to vector<2x64xf32>
    %63 = vector.extract_strided_slice %59 {offsets = [0, 192], sizes = [2, 64], strides = [1, 1]} : vector<2x256xf32> to vector<2x64xf32>
    %64 = arith.mulf %61, %37 : vector<2x64xf32>
    %65 = arith.mulf %60, %62 : vector<2x64xf32>
    %66 = arith.addf %64, %65 : vector<2x64xf32>
    %67 = math.tanh %66 : vector<2x64xf32>
    %68 = arith.mulf %63, %67 : vector<2x64xf32>
    %69 = vector.extract_strided_slice %68 {offsets = [0, 0], sizes = [2, 32], strides = [1, 1]} : vector<2x64xf32> to vector<2x32xf32>
    %c1 = arith.constant 1 : index
    %c0_19 = arith.constant 0 : index
    %c0_20 = arith.constant 0 : index
    %70 = vector.load %arg10[%c1, %c0_19, %c0_20] : memref<8x2x32xf32, #tpu.memory_space<vmem>>, vector<1x2x32xf32>
    %71 = vector.shape_cast %70 : vector<1x2x32xf32> to vector<2x32xf32>
    %72 = vector.shape_cast %69 : vector<2x32xf32> to vector<1x2x32xf32>
    tpu.vector_store %arg10[%c1, %c0_19, %c0_20], %72 {strides = array<i32>} : memref<8x2x32xf32, #tpu.memory_space<vmem>>, vector<1x2x32xf32>,
    %73 = vector.extract_strided_slice %68 {offsets = [0, 32], sizes = [2, 32], strides = [1, 1]} : vector<2x64xf32> to vector<2x32xf32>
    %c6 = arith.constant 6 : index
    %c0_21 = arith.constant 0 : index
    %c0_22 = arith.constant 0 : index
    %74 = vector.load %arg11[%c6, %c0_21, %c0_22] : memref<8x2x32xf32, #tpu.memory_space<vmem>>, vector<1x2x32xf32>
    %75 = vector.shape_cast %74 : vector<1x2x32xf32> to vector<2x32xf32>
    %76 = vector.shape_cast %73 : vector<2x32xf32> to vector<1x2x32xf32>
    tpu.vector_store %arg11[%c6, %c0_21, %c0_22], %76 {strides = array<i32>} : memref<8x2x32xf32, #tpu.memory_space<vmem>>, vector<1x2x32xf32>,
    %cst_23 = arith.constant dense<0.000000e+00> : vector<2x256xf32>
    %77 = tpu.matmul %68, %10, %cst_23 {dimension_numbers = #tpu.dot_dimension_numbers<[1], [0], [0], [1], [0, 0, 1, 1], [], []>} : vector<2x64xf32>, vector<64x256xf32>, vector<2x256xf32> -> vector<2x256xf32>
    %78 = vector.extract_strided_slice %7 {offsets = [4, 0], sizes = [2, 256], strides = [1, 1]} : vector<16x256xf32> to vector<2x256xf32>
    %79 = arith.addf %77, %78 : vector<2x256xf32>
    %80 = vector.extract_strided_slice %9 {offsets = [10, 0], sizes = [2, 256], strides = [1, 1]} : vector<16x256xf32> to vector<2x256xf32>
    %81 = arith.addf %79, %80 : vector<2x256xf32>
    %82 = math.tanh %81 : vector<2x256xf32>
    %83 = arith.negf %81 : vector<2x256xf32>
    %84 = math.exp %83 : vector<2x256xf32>
    %cst_24 = arith.constant 1.000000e+00 : f32
    %85 = vector.broadcast %cst_24 : f32 to vector<2x256xf32>
    %86 = arith.addf %85, %84 : vector<2x256xf32>
    %87 = arith.divf %85, %86 : vector<2x256xf32>
    %88 = arith.select %16, %82, %87 : vector<2x256xi1>, vector<2x256xf32>
    %89 = vector.extract_strided_slice %88 {offsets = [0, 0], sizes = [2, 64], strides = [1, 1]} : vector<2x256xf32> to vector<2x64xf32>
    %90 = vector.extract_strided_slice %88 {offsets = [0, 64], sizes = [2, 64], strides = [1, 1]} : vector<2x256xf32> to vector<2x64xf32>
    %91 = vector.extract_strided_slice %88 {offsets = [0, 128], sizes = [2, 64], strides = [1, 1]} : vector<2x256xf32> to vector<2x64xf32>
    %92 = vector.extract_strided_slice %88 {offsets = [0, 192], sizes = [2, 64], strides = [1, 1]} : vector<2x256xf32> to vector<2x64xf32>
    %93 = arith.mulf %90, %66 : vector<2x64xf32>
    %94 = arith.mulf %89, %91 : vector<2x64xf32>
    %95 = arith.addf %93, %94 : vector<2x64xf32>
    %96 = math.tanh %95 : vector<2x64xf32>
    %97 = arith.mulf %92, %96 : vector<2x64xf32>
    %98 = vector.extract_strided_slice %97 {offsets = [0, 0], sizes = [2, 32], strides = [1, 1]} : vector<2x64xf32> to vector<2x32xf32>
    %c2 = arith.constant 2 : index
    %c0_25 = arith.constant 0 : index
    %c0_26 = arith.constant 0 : index
    %99 = vector.load %arg10[%c2, %c0_25, %c0_26] : memref<8x2x32xf32, #tpu.memory_space<vmem>>, vector<1x2x32xf32>
    %100 = vector.shape_cast %99 : vector<1x2x32xf32> to vector<2x32xf32>
    %101 = vector.shape_cast %98 : vector<2x32xf32> to vector<1x2x32xf32>
    tpu.vector_store %arg10[%c2, %c0_25, %c0_26], %101 {strides = array<i32>} : memref<8x2x32xf32, #tpu.memory_space<vmem>>, vector<1x2x32xf32>,
    %102 = vector.extract_strided_slice %97 {offsets = [0, 32], sizes = [2, 32], strides = [1, 1]} : vector<2x64xf32> to vector<2x32xf32>
    %c5 = arith.constant 5 : index
    %c0_27 = arith.constant 0 : index
    %c0_28 = arith.constant 0 : index
    %103 = vector.load %arg11[%c5, %c0_27, %c0_28] : memref<8x2x32xf32, #tpu.memory_space<vmem>>, vector<1x2x32xf32>
    %104 = vector.shape_cast %103 : vector<1x2x32xf32> to vector<2x32xf32>
    %105 = vector.shape_cast %102 : vector<2x32xf32> to vector<1x2x32xf32>
    tpu.vector_store %arg11[%c5, %c0_27, %c0_28], %105 {strides = array<i32>} : memref<8x2x32xf32, #tpu.memory_space<vmem>>, vector<1x2x32xf32>,
    %cst_29 = arith.constant dense<0.000000e+00> : vector<2x256xf32>
    %106 = tpu.matmul %97, %10, %cst_29 {dimension_numbers = #tpu.dot_dimension_numbers<[1], [0], [0], [1], [0, 0, 1, 1], [], []>} : vector<2x64xf32>, vector<64x256xf32>, vector<2x256xf32> -> vector<2x256xf32>
    %107 = vector.extract_strided_slice %7 {offsets = [6, 0], sizes = [2, 256], strides = [1, 1]} : vector<16x256xf32> to vector<2x256xf32>
    %108 = arith.addf %106, %107 : vector<2x256xf32>
    %109 = vector.extract_strided_slice %9 {offsets = [8, 0], sizes = [2, 256], strides = [1, 1]} : vector<16x256xf32> to vector<2x256xf32>
    %110 = arith.addf %108, %109 : vector<2x256xf32>
    %111 = math.tanh %110 : vector<2x256xf32>
    %112 = arith.negf %110 : vector<2x256xf32>
    %113 = math.exp %112 : vector<2x256xf32>
    %cst_30 = arith.constant 1.000000e+00 : f32
    %114 = vector.broadcast %cst_30 : f32 to vector<2x256xf32>
    %115 = arith.addf %114, %113 : vector<2x256xf32>
    %116 = arith.divf %114, %115 : vector<2x256xf32>
    %117 = arith.select %16, %111, %116 : vector<2x256xi1>, vector<2x256xf32>
    %118 = vector.extract_strided_slice %117 {offsets = [0, 0], sizes = [2, 64], strides = [1, 1]} : vector<2x256xf32> to vector<2x64xf32>
    %119 = vector.extract_strided_slice %117 {offsets = [0, 64], sizes = [2, 64], strides = [1, 1]} : vector<2x256xf32> to vector<2x64xf32>
    %120 = vector.extract_strided_slice %117 {offsets = [0, 128], sizes = [2, 64], strides = [1, 1]} : vector<2x256xf32> to vector<2x64xf32>
    %121 = vector.extract_strided_slice %117 {offsets = [0, 192], sizes = [2, 64], strides = [1, 1]} : vector<2x256xf32> to vector<2x64xf32>
    %122 = arith.mulf %119, %95 : vector<2x64xf32>
    %123 = arith.mulf %118, %120 : vector<2x64xf32>
    %124 = arith.addf %122, %123 : vector<2x64xf32>
    %125 = math.tanh %124 : vector<2x64xf32>
    %126 = arith.mulf %121, %125 : vector<2x64xf32>
    %127 = vector.extract_strided_slice %126 {offsets = [0, 0], sizes = [2, 32], strides = [1, 1]} : vector<2x64xf32> to vector<2x32xf32>
    %c3 = arith.constant 3 : index
    %c0_31 = arith.constant 0 : index
    %c0_32 = arith.constant 0 : index
    %128 = vector.load %arg10[%c3, %c0_31, %c0_32] : memref<8x2x32xf32, #tpu.memory_space<vmem>>, vector<1x2x32xf32>
    %129 = vector.shape_cast %128 : vector<1x2x32xf32> to vector<2x32xf32>
    %130 = vector.shape_cast %127 : vector<2x32xf32> to vector<1x2x32xf32>
    tpu.vector_store %arg10[%c3, %c0_31, %c0_32], %130 {strides = array<i32>} : memref<8x2x32xf32, #tpu.memory_space<vmem>>, vector<1x2x32xf32>,
    %131 = vector.extract_strided_slice %126 {offsets = [0, 32], sizes = [2, 32], strides = [1, 1]} : vector<2x64xf32> to vector<2x32xf32>
    %c4 = arith.constant 4 : index
    %c0_33 = arith.constant 0 : index
    %c0_34 = arith.constant 0 : index
    %132 = vector.load %arg11[%c4, %c0_33, %c0_34] : memref<8x2x32xf32, #tpu.memory_space<vmem>>, vector<1x2x32xf32>
    %133 = vector.shape_cast %132 : vector<1x2x32xf32> to vector<2x32xf32>
    %134 = vector.shape_cast %131 : vector<2x32xf32> to vector<1x2x32xf32>
    tpu.vector_store %arg11[%c4, %c0_33, %c0_34], %134 {strides = array<i32>} : memref<8x2x32xf32, #tpu.memory_space<vmem>>, vector<1x2x32xf32>,
    %cst_35 = arith.constant dense<0.000000e+00> : vector<2x256xf32>
    %135 = tpu.matmul %126, %10, %cst_35 {dimension_numbers = #tpu.dot_dimension_numbers<[1], [0], [0], [1], [0, 0, 1, 1], [], []>} : vector<2x64xf32>, vector<64x256xf32>, vector<2x256xf32> -> vector<2x256xf32>
    %136 = vector.extract_strided_slice %7 {offsets = [8, 0], sizes = [2, 256], strides = [1, 1]} : vector<16x256xf32> to vector<2x256xf32>
    %137 = arith.addf %135, %136 : vector<2x256xf32>
    %138 = vector.extract_strided_slice %9 {offsets = [6, 0], sizes = [2, 256], strides = [1, 1]} : vector<16x256xf32> to vector<2x256xf32>
    %139 = arith.addf %137, %138 : vector<2x256xf32>
    %140 = math.tanh %139 : vector<2x256xf32>
    %141 = arith.negf %139 : vector<2x256xf32>
    %142 = math.exp %141 : vector<2x256xf32>
    %cst_36 = arith.constant 1.000000e+00 : f32
    %143 = vector.broadcast %cst_36 : f32 to vector<2x256xf32>
    %144 = arith.addf %143, %142 : vector<2x256xf32>
    %145 = arith.divf %143, %144 : vector<2x256xf32>
    %146 = arith.select %16, %140, %145 : vector<2x256xi1>, vector<2x256xf32>
    %147 = vector.extract_strided_slice %146 {offsets = [0, 0], sizes = [2, 64], strides = [1, 1]} : vector<2x256xf32> to vector<2x64xf32>
    %148 = vector.extract_strided_slice %146 {offsets = [0, 64], sizes = [2, 64], strides = [1, 1]} : vector<2x256xf32> to vector<2x64xf32>
    %149 = vector.extract_strided_slice %146 {offsets = [0, 128], sizes = [2, 64], strides = [1, 1]} : vector<2x256xf32> to vector<2x64xf32>
    %150 = vector.extract_strided_slice %146 {offsets = [0, 192], sizes = [2, 64], strides = [1, 1]} : vector<2x256xf32> to vector<2x64xf32>
    %151 = arith.mulf %148, %124 : vector<2x64xf32>
    %152 = arith.mulf %147, %149 : vector<2x64xf32>
    %153 = arith.addf %151, %152 : vector<2x64xf32>
    %154 = math.tanh %153 : vector<2x64xf32>
    %155 = arith.mulf %150, %154 : vector<2x64xf32>
    %156 = vector.extract_strided_slice %155 {offsets = [0, 0], sizes = [2, 32], strides = [1, 1]} : vector<2x64xf32> to vector<2x32xf32>
    %c4_37 = arith.constant 4 : index
    %c0_38 = arith.constant 0 : index
    %c0_39 = arith.constant 0 : index
    %157 = vector.load %arg10[%c4_37, %c0_38, %c0_39] : memref<8x2x32xf32, #tpu.memory_space<vmem>>, vector<1x2x32xf32>
    %158 = vector.shape_cast %157 : vector<1x2x32xf32> to vector<2x32xf32>
    %159 = vector.shape_cast %156 : vector<2x32xf32> to vector<1x2x32xf32>
    tpu.vector_store %arg10[%c4_37, %c0_38, %c0_39], %159 {strides = array<i32>} : memref<8x2x32xf32, #tpu.memory_space<vmem>>, vector<1x2x32xf32>,
    %160 = vector.extract_strided_slice %155 {offsets = [0, 32], sizes = [2, 32], strides = [1, 1]} : vector<2x64xf32> to vector<2x32xf32>
    %c3_40 = arith.constant 3 : index
    %c0_41 = arith.constant 0 : index
    %c0_42 = arith.constant 0 : index
    %161 = vector.load %arg11[%c3_40, %c0_41, %c0_42] : memref<8x2x32xf32, #tpu.memory_space<vmem>>, vector<1x2x32xf32>
    %162 = vector.shape_cast %161 : vector<1x2x32xf32> to vector<2x32xf32>
    %163 = vector.shape_cast %160 : vector<2x32xf32> to vector<1x2x32xf32>
    tpu.vector_store %arg11[%c3_40, %c0_41, %c0_42], %163 {strides = array<i32>} : memref<8x2x32xf32, #tpu.memory_space<vmem>>, vector<1x2x32xf32>,
    %cst_43 = arith.constant dense<0.000000e+00> : vector<2x256xf32>
    %164 = tpu.matmul %155, %10, %cst_43 {dimension_numbers = #tpu.dot_dimension_numbers<[1], [0], [0], [1], [0, 0, 1, 1], [], []>} : vector<2x64xf32>, vector<64x256xf32>, vector<2x256xf32> -> vector<2x256xf32>
    %165 = vector.extract_strided_slice %7 {offsets = [10, 0], sizes = [2, 256], strides = [1, 1]} : vector<16x256xf32> to vector<2x256xf32>
    %166 = arith.addf %164, %165 : vector<2x256xf32>
    %167 = vector.extract_strided_slice %9 {offsets = [4, 0], sizes = [2, 256], strides = [1, 1]} : vector<16x256xf32> to vector<2x256xf32>
    %168 = arith.addf %166, %167 : vector<2x256xf32>
    %169 = math.tanh %168 : vector<2x256xf32>
    %170 = arith.negf %168 : vector<2x256xf32>
    %171 = math.exp %170 : vector<2x256xf32>
    %cst_44 = arith.constant 1.000000e+00 : f32
    %172 = vector.broadcast %cst_44 : f32 to vector<2x256xf32>
    %173 = arith.addf %172, %171 : vector<2x256xf32>
    %174 = arith.divf %172, %173 : vector<2x256xf32>
    %175 = arith.select %16, %169, %174 : vector<2x256xi1>, vector<2x256xf32>
    %176 = vector.extract_strided_slice %175 {offsets = [0, 0], sizes = [2, 64], strides = [1, 1]} : vector<2x256xf32> to vector<2x64xf32>
    %177 = vector.extract_strided_slice %175 {offsets = [0, 64], sizes = [2, 64], strides = [1, 1]} : vector<2x256xf32> to vector<2x64xf32>
    %178 = vector.extract_strided_slice %175 {offsets = [0, 128], sizes = [2, 64], strides = [1, 1]} : vector<2x256xf32> to vector<2x64xf32>
    %179 = vector.extract_strided_slice %175 {offsets = [0, 192], sizes = [2, 64], strides = [1, 1]} : vector<2x256xf32> to vector<2x64xf32>
    %180 = arith.mulf %177, %153 : vector<2x64xf32>
    %181 = arith.mulf %176, %178 : vector<2x64xf32>
    %182 = arith.addf %180, %181 : vector<2x64xf32>
    %183 = math.tanh %182 : vector<2x64xf32>
    %184 = arith.mulf %179, %183 : vector<2x64xf32>
    %185 = vector.extract_strided_slice %184 {offsets = [0, 0], sizes = [2, 32], strides = [1, 1]} : vector<2x64xf32> to vector<2x32xf32>
    %c5_45 = arith.constant 5 : index
    %c0_46 = arith.constant 0 : index
    %c0_47 = arith.constant 0 : index
    %186 = vector.load %arg10[%c5_45, %c0_46, %c0_47] : memref<8x2x32xf32, #tpu.memory_space<vmem>>, vector<1x2x32xf32>
    %187 = vector.shape_cast %186 : vector<1x2x32xf32> to vector<2x32xf32>
    %188 = vector.shape_cast %185 : vector<2x32xf32> to vector<1x2x32xf32>
    tpu.vector_store %arg10[%c5_45, %c0_46, %c0_47], %188 {strides = array<i32>} : memref<8x2x32xf32, #tpu.memory_space<vmem>>, vector<1x2x32xf32>,
    %189 = vector.extract_strided_slice %184 {offsets = [0, 32], sizes = [2, 32], strides = [1, 1]} : vector<2x64xf32> to vector<2x32xf32>
    %c2_48 = arith.constant 2 : index
    %c0_49 = arith.constant 0 : index
    %c0_50 = arith.constant 0 : index
    %190 = vector.load %arg11[%c2_48, %c0_49, %c0_50] : memref<8x2x32xf32, #tpu.memory_space<vmem>>, vector<1x2x32xf32>
    %191 = vector.shape_cast %190 : vector<1x2x32xf32> to vector<2x32xf32>
    %192 = vector.shape_cast %189 : vector<2x32xf32> to vector<1x2x32xf32>
    tpu.vector_store %arg11[%c2_48, %c0_49, %c0_50], %192 {strides = array<i32>} : memref<8x2x32xf32, #tpu.memory_space<vmem>>, vector<1x2x32xf32>,
    %cst_51 = arith.constant dense<0.000000e+00> : vector<2x256xf32>
    %193 = tpu.matmul %184, %10, %cst_51 {dimension_numbers = #tpu.dot_dimension_numbers<[1], [0], [0], [1], [0, 0, 1, 1], [], []>} : vector<2x64xf32>, vector<64x256xf32>, vector<2x256xf32> -> vector<2x256xf32>
    %194 = vector.extract_strided_slice %7 {offsets = [12, 0], sizes = [2, 256], strides = [1, 1]} : vector<16x256xf32> to vector<2x256xf32>
    %195 = arith.addf %193, %194 : vector<2x256xf32>
    %196 = vector.extract_strided_slice %9 {offsets = [2, 0], sizes = [2, 256], strides = [1, 1]} : vector<16x256xf32> to vector<2x256xf32>
    %197 = arith.addf %195, %196 : vector<2x256xf32>
    %198 = math.tanh %197 : vector<2x256xf32>
    %199 = arith.negf %197 : vector<2x256xf32>
    %200 = math.exp %199 : vector<2x256xf32>
    %cst_52 = arith.constant 1.000000e+00 : f32
    %201 = vector.broadcast %cst_52 : f32 to vector<2x256xf32>
    %202 = arith.addf %201, %200 : vector<2x256xf32>
    %203 = arith.divf %201, %202 : vector<2x256xf32>
    %204 = arith.select %16, %198, %203 : vector<2x256xi1>, vector<2x256xf32>
    %205 = vector.extract_strided_slice %204 {offsets = [0, 0], sizes = [2, 64], strides = [1, 1]} : vector<2x256xf32> to vector<2x64xf32>
    %206 = vector.extract_strided_slice %204 {offsets = [0, 64], sizes = [2, 64], strides = [1, 1]} : vector<2x256xf32> to vector<2x64xf32>
    %207 = vector.extract_strided_slice %204 {offsets = [0, 128], sizes = [2, 64], strides = [1, 1]} : vector<2x256xf32> to vector<2x64xf32>
    %208 = vector.extract_strided_slice %204 {offsets = [0, 192], sizes = [2, 64], strides = [1, 1]} : vector<2x256xf32> to vector<2x64xf32>
    %209 = arith.mulf %206, %182 : vector<2x64xf32>
    %210 = arith.mulf %205, %207 : vector<2x64xf32>
    %211 = arith.addf %209, %210 : vector<2x64xf32>
    %212 = math.tanh %211 : vector<2x64xf32>
    %213 = arith.mulf %208, %212 : vector<2x64xf32>
    %214 = vector.extract_strided_slice %213 {offsets = [0, 0], sizes = [2, 32], strides = [1, 1]} : vector<2x64xf32> to vector<2x32xf32>
    %c6_53 = arith.constant 6 : index
    %c0_54 = arith.constant 0 : index
    %c0_55 = arith.constant 0 : index
    %215 = vector.load %arg10[%c6_53, %c0_54, %c0_55] : memref<8x2x32xf32, #tpu.memory_space<vmem>>, vector<1x2x32xf32>
    %216 = vector.shape_cast %215 : vector<1x2x32xf32> to vector<2x32xf32>
    %217 = vector.shape_cast %214 : vector<2x32xf32> to vector<1x2x32xf32>
    tpu.vector_store %arg10[%c6_53, %c0_54, %c0_55], %217 {strides = array<i32>} : memref<8x2x32xf32, #tpu.memory_space<vmem>>, vector<1x2x32xf32>,
    %218 = vector.extract_strided_slice %213 {offsets = [0, 32], sizes = [2, 32], strides = [1, 1]} : vector<2x64xf32> to vector<2x32xf32>
    %c1_56 = arith.constant 1 : index
    %c0_57 = arith.constant 0 : index
    %c0_58 = arith.constant 0 : index
    %219 = vector.load %arg11[%c1_56, %c0_57, %c0_58] : memref<8x2x32xf32, #tpu.memory_space<vmem>>, vector<1x2x32xf32>
    %220 = vector.shape_cast %219 : vector<1x2x32xf32> to vector<2x32xf32>
    %221 = vector.shape_cast %218 : vector<2x32xf32> to vector<1x2x32xf32>
    tpu.vector_store %arg11[%c1_56, %c0_57, %c0_58], %221 {strides = array<i32>} : memref<8x2x32xf32, #tpu.memory_space<vmem>>, vector<1x2x32xf32>,
    %cst_59 = arith.constant dense<0.000000e+00> : vector<2x256xf32>
    %222 = tpu.matmul %213, %10, %cst_59 {dimension_numbers = #tpu.dot_dimension_numbers<[1], [0], [0], [1], [0, 0, 1, 1], [], []>} : vector<2x64xf32>, vector<64x256xf32>, vector<2x256xf32> -> vector<2x256xf32>
    %223 = vector.extract_strided_slice %7 {offsets = [14, 0], sizes = [2, 256], strides = [1, 1]} : vector<16x256xf32> to vector<2x256xf32>
    %224 = arith.addf %222, %223 : vector<2x256xf32>
    %225 = vector.extract_strided_slice %9 {offsets = [0, 0], sizes = [2, 256], strides = [1, 1]} : vector<16x256xf32> to vector<2x256xf32>
    %226 = arith.addf %224, %225 : vector<2x256xf32>
    %227 = math.tanh %226 : vector<2x256xf32>
    %228 = arith.negf %226 : vector<2x256xf32>
    %229 = math.exp %228 : vector<2x256xf32>
    %cst_60 = arith.constant 1.000000e+00 : f32
    %230 = vector.broadcast %cst_60 : f32 to vector<2x256xf32>
    %231 = arith.addf %230, %229 : vector<2x256xf32>
    %232 = arith.divf %230, %231 : vector<2x256xf32>
    %233 = arith.select %16, %227, %232 : vector<2x256xi1>, vector<2x256xf32>
    %234 = vector.extract_strided_slice %233 {offsets = [0, 0], sizes = [2, 64], strides = [1, 1]} : vector<2x256xf32> to vector<2x64xf32>
    %235 = vector.extract_strided_slice %233 {offsets = [0, 64], sizes = [2, 64], strides = [1, 1]} : vector<2x256xf32> to vector<2x64xf32>
    %236 = vector.extract_strided_slice %233 {offsets = [0, 128], sizes = [2, 64], strides = [1, 1]} : vector<2x256xf32> to vector<2x64xf32>
    %237 = vector.extract_strided_slice %233 {offsets = [0, 192], sizes = [2, 64], strides = [1, 1]} : vector<2x256xf32> to vector<2x64xf32>
    %238 = arith.mulf %235, %211 : vector<2x64xf32>
    %239 = arith.mulf %234, %236 : vector<2x64xf32>
    %240 = arith.addf %238, %239 : vector<2x64xf32>
    %241 = math.tanh %240 : vector<2x64xf32>
    %242 = arith.mulf %237, %241 : vector<2x64xf32>
    %243 = vector.extract_strided_slice %242 {offsets = [0, 0], sizes = [2, 32], strides = [1, 1]} : vector<2x64xf32> to vector<2x32xf32>
    %c7_61 = arith.constant 7 : index
    %c0_62 = arith.constant 0 : index
    %c0_63 = arith.constant 0 : index
    %244 = vector.load %arg10[%c7_61, %c0_62, %c0_63] : memref<8x2x32xf32, #tpu.memory_space<vmem>>, vector<1x2x32xf32>
    %245 = vector.shape_cast %244 : vector<1x2x32xf32> to vector<2x32xf32>
    %246 = vector.shape_cast %243 : vector<2x32xf32> to vector<1x2x32xf32>
    tpu.vector_store %arg10[%c7_61, %c0_62, %c0_63], %246 {strides = array<i32>} : memref<8x2x32xf32, #tpu.memory_space<vmem>>, vector<1x2x32xf32>,
    %247 = vector.extract_strided_slice %242 {offsets = [0, 32], sizes = [2, 32], strides = [1, 1]} : vector<2x64xf32> to vector<2x32xf32>
    %c0_64 = arith.constant 0 : index
    %c0_65 = arith.constant 0 : index
    %c0_66 = arith.constant 0 : index
    %248 = vector.load %arg11[%c0_64, %c0_65, %c0_66] : memref<8x2x32xf32, #tpu.memory_space<vmem>>, vector<1x2x32xf32>
    %249 = vector.shape_cast %248 : vector<1x2x32xf32> to vector<2x32xf32>
    %250 = vector.shape_cast %247 : vector<2x32xf32> to vector<1x2x32xf32>
    tpu.vector_store %arg11[%c0_64, %c0_65, %c0_66], %250 {strides = array<i32>} : memref<8x2x32xf32, #tpu.memory_space<vmem>>, vector<1x2x32xf32>,
    %c0_67 = arith.constant 0 : index
    %c0_68 = arith.constant 0 : index
    %c0_69 = arith.constant 0 : index
    %251 = vector.load %arg10[%c0_67, %c0_68, %c0_69] : memref<8x2x32xf32, #tpu.memory_space<vmem>>, vector<8x2x32xf32>
    %252 = math.tanh %251 : vector<8x2x32xf32>
    %c0_70 = arith.constant 0 : index
    %c0_71 = arith.constant 0 : index
    %c0_72 = arith.constant 0 : index
    %253 = vector.load %arg11[%c0_70, %c0_71, %c0_72] : memref<8x2x32xf32, #tpu.memory_space<vmem>>, vector<8x2x32xf32>
    %254 = math.tanh %253 : vector<8x2x32xf32>
    %c0_73 = arith.constant 0 : index
    %c0_74 = arith.constant 0 : index
    %255 = vector.load %arg4[%c0_73, %c0_74] : memref<1x32xf32, #tpu.memory_space<vmem>>, vector<1x32xf32>
    %256 = vector.shape_cast %255 : vector<1x32xf32> to vector<1x1x32xf32>
    %c0_75 = arith.constant 0 : index
    %c0_76 = arith.constant 0 : index
    %257 = vector.load %arg5[%c0_75, %c0_76] : memref<1x32xf32, #tpu.memory_space<vmem>>, vector<1x32xf32>
    %258 = vector.shape_cast %257 : vector<1x32xf32> to vector<1x1x32xf32>
    %259 = vector.broadcast %256 : vector<1x1x32xf32> to vector<8x2x32xf32>
    %260 = arith.mulf %252, %259 : vector<8x2x32xf32>
    %cst_77 = arith.constant dense<0.000000e+00> : vector<8x2xf32>
    %261 = vector.multi_reduction <add>, %260, %cst_77 [2] : vector<8x2x32xf32> to vector<8x2xf32>
    %262 = vector.shape_cast %261 : vector<8x2xf32> to vector<8x2x1xf32>
    %263 = vector.broadcast %258 : vector<1x1x32xf32> to vector<8x2x32xf32>
    %264 = arith.mulf %254, %263 : vector<8x2x32xf32>
    %cst_78 = arith.constant dense<0.000000e+00> : vector<8x2xf32>
    %265 = vector.multi_reduction <add>, %264, %cst_78 [2] : vector<8x2x32xf32> to vector<8x2xf32>
    %266 = vector.shape_cast %265 : vector<8x2xf32> to vector<8x2x1xf32>
    %267 = arith.addf %262, %266 : vector<8x2x1xf32>
    %cst_79 = arith.constant dense<0xFF800000> : vector<2x1xf32>
    %268 = vector.multi_reduction <maximumf>, %267, %cst_79 [0] : vector<8x2x1xf32> to vector<2x1xf32>
    %269 = vector.shape_cast %268 : vector<2x1xf32> to vector<1x2x1xf32>
    %270 = vector.broadcast %269 : vector<1x2x1xf32> to vector<8x2x1xf32>
    %271 = arith.subf %267, %270 : vector<8x2x1xf32>
    %272 = math.exp %271 : vector<8x2x1xf32>
    %cst_80 = arith.constant dense<0.000000e+00> : vector<2x1xf32>
    %273 = vector.multi_reduction <add>, %272, %cst_80 [0] : vector<8x2x1xf32> to vector<2x1xf32>
    %274 = vector.shape_cast %273 : vector<2x1xf32> to vector<1x2x1xf32>
    %275 = vector.broadcast %274 : vector<1x2x1xf32> to vector<8x2x1xf32>
    %276 = arith.divf %272, %275 : vector<8x2x1xf32>
    %277 = vector.broadcast %276 : vector<8x2x1xf32> to vector<8x2x32xf32>
    %278 = arith.mulf %252, %277 : vector<8x2x32xf32>
    %cst_81 = arith.constant dense<0.000000e+00> : vector<2x32xf32>
    %279 = vector.multi_reduction <add>, %278, %cst_81 [0] : vector<8x2x32xf32> to vector<2x32xf32>
    %cst_82 = arith.constant 0.000000e+00 : f32
    %280 = vector.broadcast %cst_82 : f32 to vector<2x32xf32>
    %281 = arith.maximumf %279, %280 : vector<2x32xf32>
    %282 = vector.broadcast %276 : vector<8x2x1xf32> to vector<8x2x32xf32>
    %283 = arith.mulf %254, %282 : vector<8x2x32xf32>
    %cst_83 = arith.constant dense<0.000000e+00> : vector<2x32xf32>
    %284 = vector.multi_reduction <add>, %283, %cst_83 [0] : vector<8x2x32xf32> to vector<2x32xf32>
    %cst_84 = arith.constant 0.000000e+00 : f32
    %285 = vector.broadcast %cst_84 : f32 to vector<2x32xf32>
    %286 = arith.maximumf %284, %285 : vector<2x32xf32>
    %c0_85 = arith.constant 0 : index
    %c0_86 = arith.constant 0 : index
    %287 = vector.load %arg6[%c0_85, %c0_86] : memref<32x5xf32, #tpu.memory_space<vmem>>, vector<32x5xf32>
    %cst_87 = arith.constant dense<0.000000e+00> : vector<2x5xf32>
    %288 = tpu.matmul %281, %287, %cst_87 {dimension_numbers = #tpu.dot_dimension_numbers<[1], [0], [0], [1], [0, 0, 1, 1], [], []>} : vector<2x32xf32>, vector<32x5xf32>, vector<2x5xf32> -> vector<2x5xf32>
    %c0_88 = arith.constant 0 : index
    %c0_89 = arith.constant 0 : index
    %289 = vector.load %arg7[%c0_88, %c0_89] : memref<32x5xf32, #tpu.memory_space<vmem>>, vector<32x5xf32>
    %cst_90 = arith.constant dense<0.000000e+00> : vector<2x5xf32>
    %290 = tpu.matmul %286, %289, %cst_90 {dimension_numbers = #tpu.dot_dimension_numbers<[1], [0], [0], [1], [0, 0, 1, 1], [], []>} : vector<2x32xf32>, vector<32x5xf32>, vector<2x5xf32> -> vector<2x5xf32>
    %291 = arith.addf %288, %290 : vector<2x5xf32>
    %c0_91 = arith.constant 0 : index
    %c0_92 = arith.constant 0 : index
    %292 = vector.load %arg8[%c0_91, %c0_92] : memref<1x5xf32, #tpu.memory_space<vmem>>, vector<1x5xf32>
    %293 = vector.broadcast %292 : vector<1x5xf32> to vector<2x5xf32>
    %294 = arith.addf %291, %293 : vector<2x5xf32>
    %c0_93 = arith.constant 0 : index
    %c0_94 = arith.constant 0 : index
    %295 = vector.load %arg9[%c0_93, %c0_94] : memref<2x5xf32, #tpu.memory_space<vmem>>, vector<2x5xf32>
    tpu.vector_store %arg9[%c0_93, %c0_94], %294 {strides = array<i32>} : memref<2x5xf32, #tpu.memory_space<vmem>>, vector<2x5xf32>,
    return
  }
}

</mosaic_0001>

<bundles_post_ra>
// kernel: rnn_att_forward.1
= control target key start
LH: loop header
LB: loop body
LE: loop exit
PB: predicated region body
PF: predicated region fallthrough
CT: control target
= control target key end

     0   :  { %14 = vsyncpa [#allocation5], 0  ;;  %s2597_s0 = inlined_call_operand.vmem [shape: s32[16,1], index: 0, kind: input, shape index: {}]   ;;  %s2598_s1 = inlined_call_operand.hbm [shape: f32[50,256], index: 1, kind: input, shape index: {}]   ;;  %s2599_s2 = inlined_call_operand.hbm [shape: f32[50,256], index: 2, kind: input, shape index: {}]   ;;  %s2600_s3 = inlined_call_operand.vmem [shape: f32[64,256], index: 3, kind: input, shape index: {}]   ;;  %s2601_s4 = inlined_call_operand.vmem [shape: f32[1,32], index: 4, kind: input, shape index: {}]   ;;  %s2602_s5 = inlined_call_operand.vmem [shape: f32[1,32], index: 5, kind: input, shape index: {}]   ;;  %s2603_s6 = inlined_call_operand.vmem [shape: f32[32,5], index: 6, kind: input, shape index: {}]   ;;  %s2604_s7 = inlined_call_operand.vmem [shape: f32[32,5], index: 7, kind: input, shape index: {}]   ;;  %s2605_s8 = inlined_call_operand.hbm [shape: f32[1,5], index: 8, kind: input, shape index: {}]   ;;  %s2606_s9 = inlined_call_operand.hbm [shape: f32[2,5], index: 9, kind: output, shape index: {}]  }
   0x1   :  { %15 = vsyncpa [#allocation8], 0 }
   0x2   :  { %16 = vsyncpa [#allocation6], 0  ;;  %s1982_s30 = smov [#allocation7]   ;;  %s1983_s11 = smov [#allocation4]  }
   0x3   :  { %s36_s10 = sshll.u32 %s1982_s30, 4  ;;  %s24_s12 = sshll.u32 %s1983_s11, 4  ;;  %s37_s10 = int_to_ptr.vmem [resolvable:$true] %s36_s10  ;;  %s25_s12 = int_to_ptr.vmem [resolvable:$true] %s24_s12 }
   0x4   :  { %s1904_s13 = scalar_lea.vmem %s37_s10, 1792  ;;  %p1909_p1 = scmp.lt.s32.totalorder %s37_s10, %s37_s10 }
   0x5   :  { %p1905_p0 = scmp.ne.s32.totalorder %s37_s10, %s1904_s13  ;;  %p1910_p2 = scmp.lt.s32.totalorder %s1904_s13, %s1904_s13 }
   0x7   :  { %p1911_p3 = por %p1910_p2, %p1909_p1 }
   0x9   :  { %p1912_p4 = pnand %p1911_p3, %p1905_p0 }
   0xb   :  { %1915 = shalt.err (!%p1912_p4)
}
   0xc   :  { %s1984_s14 = smov 256   ;;  %s1985_s15 = smov 16  }
   0xd   :  { %42 = dma.hbm_to_vmem [thread:$0]  %s2599_s2, 1792, %s37_s10, [#allocation8], %s1984_s14, %s1984_s14, %s1985_s15  }
   0xe   :  { %s1924_s18 = scalar_lea.vmem %s25_s12, 1792  ;;  %p1929_p6 = scmp.lt.s32.totalorder %s25_s12, %s25_s12 }
   0xf   :  { %p1925_p5 = scmp.ne.s32.totalorder %s25_s12, %s1924_s18  ;;  %p1930_p7 = scmp.lt.s32.totalorder %s1924_s18, %s1924_s18 }
  0x11   :  { %p1931_p8 = por %p1930_p7, %p1929_p6 }
  0x13   :  { %p1932_p9 = pnand %p1931_p8, %p1925_p5 }
  0x15   :  { %1935 = shalt.err (!%p1932_p9)
}
  0x16   :  { %30 = dma.hbm_to_vmem [thread:$0]  %s2598_s1, 1792, %s25_s12, [#allocation5], %s1984_s14, %s1984_s14, %s1985_s15  }
  0x17   :  { %s1986_s21 = smov [#allocation9]  }
  0x18   :  { %s59_s22 = sshll.u32 %s1986_s21, 4  ;;  %s60_s22 = int_to_ptr.vmem [resolvable:$true] %s59_s22 }
  0x19   :  { %s1944_s23 = scalar_lea.vmem %s60_s22, 16  ;;  %s1948_s24 = scalar_lea.vmem %s60_s22, 32 }
  0x1a   :  { %p1945_p10 = scmp.ne.s32.totalorder %s60_s22, %s1944_s23  ;;  %p1949_p11 = scmp.lt.s32.totalorder %s60_s22, %s60_s22 }
  0x1b   :  { %p1950_p12 = scmp.lt.s32.totalorder %s1948_s24, %s1944_s23 }
  0x1d   :  { %p1951_p13 = por %p1950_p12, %p1949_p11 }
  0x1f   :  { %p1952_p0 = pnand %p1951_p13, %p1945_p10 }
  0x21   :  { %1955 = shalt.err (!%p1952_p0)
}
  0x22   :  { %62 = dma.hbm_to_vmem [thread:$0]  %s2605_s8, 16, %s60_s22, [#allocation8]  }
  0x23   :  { %1976 = dma.done.wait [#allocation5], 1792  }
  0x24   :  { %1977 = vsyncadd [#allocation5], 4294965504 }
  0x25   :  { %1978 = dma.done.wait [#allocation8], 1808  }
  0x26   :  { %1979 = vsyncadd [#allocation8], 4294965488  ;;  %v1987_v0 = vmov 0   ;;  %v1988_v1 = vmov 0.0   ;;  %vm109_vm0 = vcmask 1041408   ;;  %v72_v2 = vld [vmem:[%s2597_s0] sm:$0xff]  ;;  %v74_v33 = vlaneseq }
  0x27   :  { %1749 = vset.pattern.permute.xlu0 %v1987_v0  ;;  %180 = vmatprep.mubr.f32.mxu0 %v1988_v1  ;;  %v73_v3 = vld [vmem:[%s2597_s0 + $0x8] sm:$0xff]  ;;  %v100_v5 = vld [vmem:[#allocation4 + $0x60] sm:$0x3]  ;;  %v206_v6 = vld [vmem:[#allocation7 + $0x68] sm:$0x3]  ;;  %vm102_vm1 = vcmask 408576  }
  0x28   :  { %277 = vmatprep.mubr.f32.mxu1 %v1988_v1  ;;  %v101_v4 = vld [vmem:[#allocation4 + $0x68] sm:$0x3]  ;;  %77 = vperm.xlu0 %1749, %v72_v2   ;;  %v99_v7 = vld [vmem:[#allocation4 + $0x58] sm:$0xff]  ;;  %v205_v8 = vld [vmem:[#allocation7 + $0x60] sm:$0x3]  ;;  %v2071_v34 = vand.u32 127, %v74_v33 }
  0x29   :  { %1670 = vmatprep.subr.msk.mxu0 %vm109_vm0, %v101_v4  ;;  %1674 = vmatprep.subr.msk.mxu1 %vm109_vm0, %v206_v6  ;;  %v98_v9 = vld [vmem:[#allocation4 + $0x50] sm:$0xff]  ;;  %v204_v10 = vld [vmem:[#allocation7 + $0x58] sm:$0xff]  ;;  %v203_v12 = vld [vmem:[#allocation7 + $0x50] sm:$0xff]  ;;  %vm425_vm5 = vcmask 254976   ;;  %vm313_vm6 = vcmask 523264   ;;  %s1990_s13 = smov 32  }
  0x2a   :  { %1671 = vmatpush1.msk.msra.mxu0 %vm109_vm0, %v100_v5  ;;  %1675 = vmatpush1.msk.msra.mxu1 %vm109_vm0, %v205_v8  ;;  %v97_v11 = vld [vmem:[#allocation4 + $0x48] sm:$0xff]  ;;  %v96_v13 = vld [vmem:[#allocation4 + $0x40] sm:$0xff]  ;;  %v202_v14 = vld [vmem:[#allocation7 + $0x48] sm:$0xff]  ;;  %vm1991_vm7 = vmmov 0   ;;  %vm1495_vm8 = vcmask 261120   ;;  %vm1650_vm9 = vcmask 33792  }
  0x2b   :  { %136 = vmatprep.subr.mxu0 %v99_v7  ;;  %233 = vmatprep.subr.mxu1 %v204_v10  ;;  %v95_v15 = vld [vmem:[#allocation4 + $0x38] sm:$0xff]  ;;  %v201_v16 = vld [vmem:[#allocation7 + $0x40] sm:$0xff]  ;;  %v200_v18 = vld [vmem:[#allocation7 + $0x38] sm:$0xff] }
  0x2c   :  { %137 = vmatpush1.msra.mxu0 %v98_v9  ;;  %80 = vperm.xlu0 %1749, %v73_v3   ;;  %v94_v17 = vld [vmem:[#allocation4 + $0x30] sm:$0xff]  ;;  %v93_v19 = vld [vmem:[#allocation4 + $0x28] sm:$0xff]  ;;  %v199_v20 = vld [vmem:[#allocation7 + $0x30] sm:$0xff] }
  0x2d   :  { %138 = vmatprep.subr.mxu0 %v97_v11  ;;  %234 = vmatpush1.msra.mxu1 %v203_v12  ;;  %v92_v21 = vld [vmem:[#allocation4 + $0x20] sm:$0xff]  ;;  %v198_v22 = vld [vmem:[#allocation7 + $0x28] sm:$0xff]  ;;  %v197_v24 = vld [vmem:[#allocation7 + $0x20] sm:$0xff] }
  0x2e   :  { %139 = vmatpush1.msra.mxu0 %v96_v13  ;;  %235 = vmatprep.subr.mxu1 %v202_v14  ;;  %v91_v23 = vld [vmem:[#allocation4 + $0x18] sm:$0xff]  ;;  %v90_v25 = vld [vmem:[#allocation4 + $0x10] sm:$0xff]  ;;  %v196_v26 = vld [vmem:[#allocation7 + $0x18] sm:$0xff]  ;;  %v2231_v13 = vadd.s32 128, %v2071_v34 }
  0x2f   :  { %140 = vmatprep.subr.mxu0 %v95_v15  ;;  %236 = vmatpush1.msra.mxu1 %v201_v16  ;;  %v89_v27 = vld [vmem:[#allocation4 + $0x8] sm:$0xff]  ;;  %v195_v28 = vld [vmem:[#allocation7 + $0x10] sm:$0xff]  ;;  %v194_v30 = vld [vmem:[#allocation7 + $0x8] sm:$0xff] }
  0x30   :  { %141 = vmatpush1.msra.mxu0 %v94_v17  ;;  %237 = vmatprep.subr.mxu1 %v200_v18  ;;  %v88_v29 = vld [vmem:[#allocation4] sm:$0xff]  ;;  %v2067_v31 = vld [vmem:[%s2600_s3 + $0x78] sm:$0xff]  ;;  %v193_v32 = vld [vmem:[#allocation7] sm:$0xff]  ;;  %vm310_vm4 = vcmp.lt.s32.totalorder %v2231_v13, 192 }
  0x31   :  { %142 = vmatprep.subr.mxu0 %v93_v19  ;;  %238 = vmatpush1.msra.mxu1 %v199_v20  ;;  %v2077_v36 = vld [vmem:[%s2600_s3 + $0x70] sm:$0xff]  ;;  %v2083_v38 = vld [vmem:[%s2600_s3 + $0x68] sm:$0xff]  ;;  %v2090_v39 = vld [vmem:[%s2600_s3 + $0x60] sm:$0xff] }
  0x32   :  { %143 = vmatpush1.msra.mxu0 %v92_v21  ;;  %239 = vmatprep.subr.mxu1 %v198_v22  ;;  %v2097_v41 = vld [vmem:[%s2600_s3 + $0x58] sm:$0xff]  ;;  %v2105_v42 = vld [vmem:[%s2600_s3 + $0x50] sm:$0xff]  ;;  %v2112_v44 = vld [vmem:[%s2600_s3 + $0x48] sm:$0xff] }
  0x33   :  { %144 = vmatprep.subr.mxu0 %v91_v23  ;;  %240 = vmatpush1.msra.mxu1 %v197_v24  ;;  %v2120_v45 = vld [vmem:[%s2600_s3 + $0x40] sm:$0xff]  ;;  %v2127_v46 = vld [vmem:[%s2600_s3 + $0x38] sm:$0xff]  ;;  %v2133_v47 = vld [vmem:[%s2600_s3 + $0x30] sm:$0xff] }
  0x34   :  { %145 = vmatpush1.msra.mxu0 %v90_v25  ;;  %241 = vmatprep.subr.mxu1 %v196_v26  ;;  %v2140_v48 = vld [vmem:[%s2600_s3 + $0x28] sm:$0xff]  ;;  %v2147_v49 = vld [vmem:[%s2600_s3 + $0x20] sm:$0xff]  ;;  %v2154_v50 = vld [vmem:[%s2600_s3 + $0x18] sm:$0xff] }
  0x35   :  { %146 = vmatprep.subr.mxu0 %v89_v27  ;;  %242 = vmatpush1.msra.mxu1 %v195_v28  ;;  %v2161_v51 = vld [vmem:[%s2600_s3 + $0x10] sm:$0xff]  ;;  %v2168_v52 = vld [vmem:[%s2600_s3 + $0x8] sm:$0xff]  ;;  %v2175_v53 = vld [vmem:[%s2600_s3] sm:$0xff]  ;;  %s1989_s3 = smov 64  }
  0x36   :  { %147 = vmatpush1.msra.mxu0 %v88_v29  ;;  %243 = vmatprep.subr.mxu1 %v194_v30 }
  0x37   :  { %333 = vmatprep.subr.mxu0 %v2067_v31  ;;  %244 = vmatpush1.msra.mxu1 %v193_v32 }
  0x38   :  { %456 = vmatprep.subr.mxu1 %v2067_v31 }
  0xa3   :  { %v78_v35 = vpop.permute.xlu0 %77 }
  0xa4   :  { %vm82_vm2 = vcmp.eq.s32.totalorder %v78_v35, %v2071_v34 }
  0xa5   :  { %v1668_v37 = vsel %vm82_vm2, 1.0, %v1988_v1 }
  0xa6   :  { %1672 = vmatmul.mubr.msk.f32.vlgmr.msra.gmra.mxu0 %vm102_vm1, %v1668_v37  ;;  %1676 = vmatmul.mubr.msk.f32.vlgmr.msra.gmra.mxu1 %vm102_vm1, %v1668_v37 }
  0xa7   :  { %334 = vmatpush1.msra.mxu0 %v2077_v36  ;;  %v81_v40 = vpop.permute.xlu0 %80  ;;  %186 = vmatprep.mubr.f32.mxu0 %v1988_v1 }
  0xa8   :  { %335 = vmatprep.subr.mxu0 %v2083_v38  ;;  %vm83_vm3 = vcmp.eq.s32.totalorder %v81_v40, %v2071_v34  ;;  %283 = vmatprep.mubr.f32.mxu1 %v1988_v1 }
  0xa9   :  { %v1669_v43 = vsel %vm83_vm3, 1.0, %v1988_v1  ;;  %336 = vmatpush1.msra.mxu0 %v2090_v39  ;;  %457 = vmatpush1.msra.mxu1 %v2077_v36 }
  0xaa   :  { %337 = vmatprep.subr.mxu0 %v2097_v41  ;;  %1673 = vmatmul.mubr.msk.f32.gmra.mxu0 %vm102_vm1, %v1669_v43 }
  0xab   :  { %1677 = vmatmul.mubr.msk.f32.gmra.mxu1 %vm102_vm1, %v1669_v43  ;;  %338 = vmatpush1.msra.mxu0 %v2105_v42 }
  0xac   :  { %339 = vmatprep.subr.mxu0 %v2112_v44  ;;  %381 = vmatprep.mubr.f32.mxu0 %v1988_v1 }
  0xad   :  { %340 = vmatpush1.msra.mxu0 %v2120_v45  ;;  %458 = vmatprep.subr.mxu1 %v2083_v38 }
  0xae   :  { %341 = vmatprep.subr.mxu0 %v2127_v46  ;;  %459 = vmatpush1.msra.mxu1 %v2090_v39 }
  0xaf   :  { %342 = vmatpush1.msra.mxu0 %v2133_v47  ;;  %460 = vmatprep.subr.mxu1 %v2097_v41 }
  0xb0   :  { %343 = vmatprep.subr.mxu0 %v2140_v48  ;;  %461 = vmatpush1.msra.mxu1 %v2105_v42 }
  0xb1   :  { %344 = vmatpush1.msra.mxu0 %v2147_v49  ;;  %462 = vmatprep.subr.mxu1 %v2112_v44 }
  0xb2   :  { %345 = vmatprep.subr.mxu0 %v2154_v50  ;;  %463 = vmatpush1.msra.mxu1 %v2120_v45 }
  0xb3   :  { %346 = vmatpush1.msra.mxu0 %v2161_v51  ;;  %464 = vmatprep.subr.mxu1 %v2127_v46 }
  0xb4   :  { %347 = vmatprep.subr.mxu0 %v2168_v52  ;;  %465 = vmatpush1.msra.mxu1 %v2133_v47 }
  0xb5   :  { %348 = vmatpush1.msra.mxu0 %v2175_v53  ;;  %466 = vmatprep.subr.mxu1 %v2140_v48 }
  0xb6   :  { %382 = vmatmul.mubr.f32.vlgmr.msra.gmra.mxu0 %v1988_v1  ;;  %467 = vmatpush1.msra.mxu1 %v2147_v49 }
  0xb7   :  { %468 = vmatprep.subr.mxu1 %v2154_v50  ;;  %504 = vmatprep.mubr.f32.mxu1 %v1988_v1 }
  0xb8   :  { %469 = vmatpush1.msra.mxu1 %v2161_v51  ;;  %575 = vmatprep.subr.mxu0 %v2067_v31 }
  0xb9   :  { %470 = vmatprep.subr.mxu1 %v2168_v52  ;;  %576 = vmatpush1.msra.mxu0 %v2077_v36 }
  0xba   :  { %471 = vmatpush1.msra.mxu1 %v2175_v53  ;;  %577 = vmatprep.subr.mxu0 %v2083_v38 }
  0xbb   :  { %578 = vmatpush1.msra.mxu0 %v2090_v39  ;;  %623 = vmatprep.mubr.f32.mxu0 %v1988_v1 }
  0xbc   :  { %579 = vmatprep.subr.mxu0 %v2097_v41  ;;  %694 = vmatprep.subr.mxu1 %v2067_v31 }
  0xbd   :  { %580 = vmatpush1.msra.mxu0 %v2105_v42 }
  0xbe   :  { %581 = vmatprep.subr.mxu0 %v2112_v44 }
  0xbf   :  { %582 = vmatpush1.msra.mxu0 %v2120_v45 }
  0xc0   :  { %583 = vmatprep.subr.mxu0 %v2127_v46 }
  0xc1   :  { %584 = vmatpush1.msra.mxu0 %v2133_v47 }
  0xc2   :  { %585 = vmatprep.subr.mxu0 %v2140_v48 }
  0xc3   :  { %586 = vmatpush1.msra.mxu0 %v2147_v49 }
  0xc4   :  { %587 = vmatprep.subr.mxu0 %v2154_v50 }
  0xc5   :  { %588 = vmatpush1.msra.mxu0 %v2161_v51 }
  0xc6   :  { %589 = vmatprep.subr.mxu0 %v2168_v52 }
  0xc7   :  { %590 = vmatpush1.msra.mxu0 %v2175_v53 }
  0xc8   :  { %805 = vmatprep.subr.mxu0 %v2067_v31 }
 0x166   :  { %v2210_v54 = vpop.f32.mrf.mxu0  ;;  %v2212_v55 = vpop.f32.mrf.mxu1 }
 0x167   :  { %v434_v25 = vrot.slane %v2210_v54, 2 }
 0x168   :  { %v2214_v56 = vpop.f32.mrf.mxu0  ;;  %v2216_v57 = vpop.f32.mrf.mxu1 }
 0x169   :  { %v435_v29 = vrot.slane %v2214_v56, 2 }
 0x16a   :  { %v2218_v58 = vpop.f32.mrf.mxu0 }
 0x16b   :  { %v2220_v59 = vpop.f32.mrf.mxu1 }
 0x16c   :  { %v2222_v60 = vpop.f32.mrf.mxu0  ;;  %v390_v0 = vrot.slane %v2220_v59, 6  ;;  %v511_v28 = vrot.slane %v2220_v59, 4 }
 0x16d   :  { %v2224_v61 = vpop.f32.mrf.mxu1 }
 0x16e   :  { %v391_v5 = vrot.slane %v2224_v61, 6  ;;  %v512_v34 = vrot.slane %v2224_v61, 4 }
 0x176   :  { %v383_v62 = vpop.f32.mrf.mxu0 }
 0x177   :  { %v384_v63 = vadd.f32 %v383_v62, %v2210_v54 }
 0x178   :  { %v385_v2 = vpop.f32.mrf.mxu0 }
 0x179   :  { %v394_v3 = vadd.f32 %v390_v0, %v384_v63  ;;  %v386_v4 = vadd.f32 %v385_v2, %v2214_v56 }
 0x17b   :  { %v1678_v6 = vmul.f32 -1.442695, %v394_v3  ;;  %v395_v7 = vadd.f32 %v391_v5, %v386_v4 }
 0x17d   :  { %1750 = vpow2.f32 %v1678_v6  ;;  %v1679_v8 = vmul.f32 -1.442695, %v395_v7 }
 0x17f   :  { %1752 = vpow2.f32 %v1679_v8 }
 0x180   :  { %1754 = vtanh.f32 %v395_v7 }
 0x18a   :  { %v1751_v9 = vpop.eup %1750 }
 0x18b   :  { %v404_v11 = vadd.f32 1.0, %v1751_v9 }
 0x18c   :  { %v1753_v10 = vpop.eup %1752 }
 0x18d   :  { %v405_v12 = vadd.f32 1.0, %v1753_v10  ;;  %v1755_v14 = vpop.eup %1754 }
 0x18f   :  { %1756 = vrcp.f32 %v405_v12 }
 0x190   :  { %1758 = vrcp.f32 %v404_v11 }
 0x19c   :  { %v1757_v15 = vpop.eup %1756 }
 0x19d   :  { %v1759_v16 = vpop.eup %1758  ;;  %v411_v17 = vsel %vm310_vm4, %v1755_v14, %v1757_v15  ;;  %v553_v14 = vrot.slane %v2210_v54, 4 }
 0x19e   :  { %v413_v18 = vmul.f32 %v1759_v16, %v411_v17  ;;  %v412_v19 = vmul.f32 0.0, %v1759_v16 }
 0x1a0   :  { %415 = vrot.lane.b32.xlu1 %v413_v18, %s1989_s3  ;;  %v554_v18 = vrot.slane %v2214_v56, 4 }
 0x212   :  { %v416_v20 = vpop.permute.xlu1 %415 }
 0x213   :  { %v418_v21 = vadd.f32 %v416_v20, %v412_v19 }
 0x215   :  { %1760 = vtanh.f32 %v418_v21 }
 0x222   :  { %v1761_v22 = vpop.eup %1760 }
 0x223   :  { %v2237_v23 = vmul.f32 %v1761_v22, %v411_v17  ;;  %v630_v17 = vrot.slane %v2220_v59, 2  ;;  %v631_v22 = vrot.slane %v2224_v61, 2 }
 0x225   :  { %422 = vrot.lane.b32.xlu1 %v2237_v23, %s1989_s3 }
 0x297   :  { %v423_v24 = vpop.permute.xlu1 %422 }
 0x298   :  { %426 = vst.msk [vmem:[#allocation2] sm:$0x3] %vm425_vm5, %v423_v24  ;;  %1680 = vmatmul.mubr.msk.f32.vlgmr.msra.gmra.mxu1 %vm313_vm6, %v423_v24 }
 0x299   :  { %695 = vmatpush1.msra.mxu1 %v2077_v36  ;;  %742 = vmatprep.mubr.f32.mxu1 %v1988_v1 }
 0x29a   :  { %696 = vmatprep.subr.mxu1 %v2083_v38 }
 0x29b   :  { %697 = vmatpush1.msra.mxu1 %v2090_v39 }
 0x29c   :  { %698 = vmatprep.subr.mxu1 %v2097_v41 }
 0x29d   :  { %699 = vmatpush1.msra.mxu1 %v2105_v42 }
 0x29e   :  { %700 = vmatprep.subr.mxu1 %v2112_v44 }
 0x29f   :  { %701 = vmatpush1.msra.mxu1 %v2120_v45 }
 0x2a0   :  { %702 = vmatprep.subr.mxu1 %v2127_v46 }
 0x2a1   :  { %703 = vmatpush1.msra.mxu1 %v2133_v47 }
 0x2a2   :  { %704 = vmatprep.subr.mxu1 %v2140_v48 }
 0x2a3   :  { %705 = vmatpush1.msra.mxu1 %v2147_v49 }
 0x2a4   :  { %706 = vmatprep.subr.mxu1 %v2154_v50 }
 0x2a5   :  { %707 = vmatpush1.msra.mxu1 %v2161_v51 }
 0x2a6   :  { %708 = vmatprep.subr.mxu1 %v2168_v52 }
 0x2a7   :  { %709 = vmatpush1.msra.mxu1 %v2175_v53 }
 0x2a8   :  { %928 = vmatprep.subr.mxu1 %v2067_v31 }
 0x358   :  { %v506_v26 = vpop.f32.mrf.mxu1 }
 0x359   :  { %v507_v27 = vadd.f32 %v506_v26, %v434_v25 }
 0x35a   :  { %v508_v30 = vpop.f32.mrf.mxu1 }
 0x35b   :  { %v515_v32 = vadd.f32 %v511_v28, %v507_v27  ;;  %v509_v33 = vadd.f32 %v508_v30, %v435_v29 }
 0x35d   :  { %v1681_v35 = vmul.f32 -1.442695, %v515_v32  ;;  %v516_v37 = vadd.f32 %v512_v34, %v509_v33 }
 0x35f   :  { %1762 = vpow2.f32 %v1681_v35  ;;  %v1682_v40 = vmul.f32 -1.442695, %v516_v37 }
 0x361   :  { %1764 = vpow2.f32 %v1682_v40 }
 0x362   :  { %1766 = vtanh.f32 %v516_v37 }
 0x36c   :  { %v1763_v43 = vpop.eup %1762 }
 0x36d   :  { %v525_v63 = vadd.f32 1.0, %v1763_v43 }
 0x36e   :  { %v1765_v62 = vpop.eup %1764 }
 0x36f   :  { %v526_v0 = vadd.f32 1.0, %v1765_v62  ;;  %v1767_v2 = vpop.eup %1766 }
 0x371   :  { %1768 = vrcp.f32 %v526_v0 }
 0x372   :  { %1770 = vrcp.f32 %v525_v63 }
 0x37e   :  { %v1769_v3 = vpop.eup %1768 }
 0x37f   :  { %v1771_v4 = vpop.eup %1770  ;;  %v532_v5 = vsel %vm310_vm4, %v1767_v2, %v1769_v3  ;;  %v672_v3 = vrot.slane %v2210_v54, 6 }
 0x380   :  { %v534_v6 = vmul.f32 %v1771_v4, %v532_v5  ;;  %v533_v7 = vmul.f32 %v1771_v4, %v418_v21 }
 0x382   :  { %536 = vrot.lane.b32.xlu0 %v534_v6, %s1989_s3  ;;  %v673_v6 = vrot.slane %v2214_v56, 6 }
 0x3f4   :  { %v537_v8 = vpop.permute.xlu0 %536 }
 0x3f5   :  { %v539_v9 = vadd.f32 %v537_v8, %v533_v7 }
 0x3f7   :  { %1772 = vtanh.f32 %v539_v9 }
 0x404   :  { %v1773_v10 = vpop.eup %1772 }
 0x405   :  { %v2267_v11 = vmul.f32 %v1773_v10, %v532_v5 }
 0x407   :  { %543 = vrot.lane.b32.xlu1 %v2267_v11, %s1989_s3 }
 0x479   :  { %v544_v12 = vpop.permute.xlu1 %543 }
 0x47a   :  { %547 = vst.msk [vmem:[#allocation2 + $0x2] sm:$0x3] %vm425_vm5, %v544_v12  ;;  %1683 = vmatmul.mubr.msk.f32.vlgmr.msra.gmra.mxu0 %vm313_vm6, %v544_v12 }
 0x47b   :  { %806 = vmatpush1.msra.mxu0 %v2077_v36  ;;  %853 = vmatprep.mubr.f32.mxu0 %v1988_v1 }
 0x47c   :  { %807 = vmatprep.subr.mxu0 %v2083_v38 }
 0x47d   :  { %808 = vmatpush1.msra.mxu0 %v2090_v39 }
 0x47e   :  { %809 = vmatprep.subr.mxu0 %v2097_v41 }
 0x47f   :  { %810 = vmatpush1.msra.mxu0 %v2105_v42 }
 0x480   :  { %811 = vmatprep.subr.mxu0 %v2112_v44 }
 0x481   :  { %812 = vmatpush1.msra.mxu0 %v2120_v45 }
 0x482   :  { %813 = vmatprep.subr.mxu0 %v2127_v46 }
 0x483   :  { %814 = vmatpush1.msra.mxu0 %v2133_v47 }
 0x484   :  { %815 = vmatprep.subr.mxu0 %v2140_v48 }
 0x485   :  { %816 = vmatpush1.msra.mxu0 %v2147_v49 }
 0x486   :  { %817 = vmatprep.subr.mxu0 %v2154_v50 }
 0x487   :  { %818 = vmatpush1.msra.mxu0 %v2161_v51 }
 0x488   :  { %819 = vmatprep.subr.mxu0 %v2168_v52 }
 0x489   :  { %820 = vmatpush1.msra.mxu0 %v2175_v53 }
 0x48a   :  { %1047 = vmatprep.subr.mxu0 %v2067_v31 }
 0x53a   :  { %v625_v15 = vpop.f32.mrf.mxu0 }
 0x53b   :  { %v626_v16 = vadd.f32 %v625_v15, %v553_v14 }
 0x53c   :  { %v627_v19 = vpop.f32.mrf.mxu0 }
 0x53d   :  { %v634_v20 = vadd.f32 %v630_v17, %v626_v16  ;;  %v628_v21 = vadd.f32 %v627_v19, %v554_v18 }
 0x53f   :  { %v1684_v24 = vmul.f32 -1.442695, %v634_v20  ;;  %v635_v25 = vadd.f32 %v631_v22, %v628_v21 }
 0x541   :  { %1774 = vpow2.f32 %v1684_v24  ;;  %v1685_v26 = vmul.f32 -1.442695, %v635_v25 }
 0x543   :  { %1776 = vpow2.f32 %v1685_v26 }
 0x544   :  { %1778 = vtanh.f32 %v635_v25 }
 0x54e   :  { %v1775_v27 = vpop.eup %1774 }
 0x54f   :  { %v644_v29 = vadd.f32 1.0, %v1775_v27 }
 0x550   :  { %v1777_v28 = vpop.eup %1776 }
 0x551   :  { %v645_v30 = vadd.f32 1.0, %v1777_v28  ;;  %v1779_v32 = vpop.eup %1778  ;;  %v862_v28 = vrot.slane %v2212_v55, 6 }
 0x553   :  { %1780 = vrcp.f32 %v645_v30 }
 0x554   :  { %1782 = vrcp.f32 %v644_v29 }
 0x560   :  { %v1781_v33 = vpop.eup %1780 }
 0x561   :  { %v1783_v34 = vpop.eup %1782  ;;  %v651_v35 = vsel %vm310_vm4, %v1779_v32, %v1781_v33  ;;  %v863_v33 = vrot.slane %v2216_v57, 6 }
 0x562   :  { %v653_v37 = vmul.f32 %v1783_v34, %v651_v35  ;;  %v652_v40 = vmul.f32 %v1783_v34, %v539_v9 }
 0x564   :  { %655 = vrot.lane.b32.xlu0 %v653_v37, %s1989_s3 }
 0x5d6   :  { %v656_v43 = vpop.permute.xlu0 %655 }
 0x5d7   :  { %v658_v62 = vadd.f32 %v656_v43, %v652_v40 }
 0x5d9   :  { %1784 = vtanh.f32 %v658_v62 }
 0x5e6   :  { %v1785_v63 = vpop.eup %1784 }
 0x5e7   :  { %v2297_v0 = vmul.f32 %v1785_v63, %v651_v35 }
 0x5e9   :  { %662 = vrot.lane.b32.xlu1 %v2297_v0, %s1989_s3 }
 0x65b   :  { %v663_v2 = vpop.permute.xlu1 %662 }
 0x65c   :  { %666 = vst.msk [vmem:[#allocation2 + $0x4] sm:$0x3] %vm425_vm5, %v663_v2  ;;  %1686 = vmatmul.mubr.msk.f32.vlgmr.msra.gmra.mxu1 %vm313_vm6, %v663_v2 }
 0x65d   :  { %929 = vmatpush1.msra.mxu1 %v2077_v36  ;;  %976 = vmatprep.mubr.f32.mxu1 %v1988_v1 }
 0x65e   :  { %930 = vmatprep.subr.mxu1 %v2083_v38 }
 0x65f   :  { %931 = vmatpush1.msra.mxu1 %v2090_v39 }
 0x660   :  { %932 = vmatprep.subr.mxu1 %v2097_v41 }
 0x661   :  { %933 = vmatpush1.msra.mxu1 %v2105_v42 }
 0x662   :  { %934 = vmatprep.subr.mxu1 %v2112_v44 }
 0x663   :  { %935 = vmatpush1.msra.mxu1 %v2120_v45 }
 0x664   :  { %936 = vmatprep.subr.mxu1 %v2127_v46 }
 0x665   :  { %937 = vmatpush1.msra.mxu1 %v2133_v47 }
 0x666   :  { %938 = vmatprep.subr.mxu1 %v2140_v48 }
 0x667   :  { %939 = vmatpush1.msra.mxu1 %v2147_v49 }
 0x668   :  { %940 = vmatprep.subr.mxu1 %v2154_v50 }
 0x669   :  { %941 = vmatpush1.msra.mxu1 %v2161_v51 }
 0x66a   :  { %942 = vmatprep.subr.mxu1 %v2168_v52 }
 0x66b   :  { %943 = vmatpush1.msra.mxu1 %v2175_v53 }
 0x66c   :  { %1166 = vmatprep.subr.mxu1 %v2067_v31 }
 0x71c   :  { %v744_v4 = vpop.f32.mrf.mxu1 }
 0x71d   :  { %v745_v5 = vadd.f32 %v744_v4, %v672_v3 }
 0x71e   :  { %v746_v7 = vpop.f32.mrf.mxu1 }
 0x71f   :  { %v749_v8 = vadd.f32 %v745_v5, %v2220_v59  ;;  %v747_v9 = vadd.f32 %v746_v7, %v673_v6 }
 0x721   :  { %v1687_v10 = vmul.f32 -1.442695, %v749_v8  ;;  %v750_v12 = vadd.f32 %v747_v9, %v2224_v61 }
 0x723   :  { %1786 = vpow2.f32 %v1687_v10  ;;  %v1688_v14 = vmul.f32 -1.442695, %v750_v12 }
 0x725   :  { %1788 = vpow2.f32 %v1688_v14 }
 0x726   :  { %1790 = vtanh.f32 %v750_v12 }
 0x730   :  { %v1787_v15 = vpop.eup %1786 }
 0x731   :  { %v759_v17 = vadd.f32 1.0, %v1787_v15 }
 0x732   :  { %v1789_v16 = vpop.eup %1788 }
 0x733   :  { %v760_v31 = vadd.f32 1.0, %v1789_v16  ;;  %v1791_v54 = vpop.eup %1790 }
 0x735   :  { %1792 = vrcp.f32 %v760_v31 }
 0x736   :  { %1794 = vrcp.f32 %v759_v17 }
 0x742   :  { %v1793_v18 = vpop.eup %1792 }
 0x743   :  { %v1795_v56 = vpop.eup %1794  ;;  %v766_v59 = vsel %vm310_vm4, %v1791_v54, %v1793_v18 }
 0x744   :  { %v768_v19 = vmul.f32 %v1795_v56, %v766_v59  ;;  %v767_v61 = vmul.f32 %v1795_v56, %v658_v62 }
 0x746   :  { %770 = vrot.lane.b32.xlu0 %v768_v19, %s1989_s3 }
 0x7b8   :  { %v771_v20 = vpop.permute.xlu0 %770 }
 0x7b9   :  { %v773_v21 = vadd.f32 %v771_v20, %v767_v61 }
 0x7bb   :  { %1796 = vtanh.f32 %v773_v21 }
 0x7c8   :  { %v1797_v22 = vpop.eup %1796 }
 0x7c9   :  { %v2327_v24 = vmul.f32 %v1797_v22, %v766_v59  ;;  %v1025_v22 = vrot.slane %v2218_v58, 4 }
 0x7cb   :  { %777 = vrot.lane.b32.xlu1 %v2327_v24, %s1989_s3 }
 0x83d   :  { %v778_v25 = vpop.permute.xlu1 %777 }
 0x83e   :  { %781 = vst.msk [vmem:[#allocation2 + $0x6] sm:$0x3] %vm425_vm5, %v778_v25  ;;  %1689 = vmatmul.mubr.msk.f32.vlgmr.msra.gmra.mxu0 %vm313_vm6, %v778_v25 }
 0x83f   :  { %1048 = vmatpush1.msra.mxu0 %v2077_v36  ;;  %1095 = vmatprep.mubr.f32.mxu0 %v1988_v1 }
 0x840   :  { %1049 = vmatprep.subr.mxu0 %v2083_v38 }
 0x841   :  { %1050 = vmatpush1.msra.mxu0 %v2090_v39 }
 0x842   :  { %1051 = vmatprep.subr.mxu0 %v2097_v41 }
 0x843   :  { %1052 = vmatpush1.msra.mxu0 %v2105_v42 }
 0x844   :  { %1053 = vmatprep.subr.mxu0 %v2112_v44 }
 0x845   :  { %1054 = vmatpush1.msra.mxu0 %v2120_v45 }
 0x846   :  { %1055 = vmatprep.subr.mxu0 %v2127_v46 }
 0x847   :  { %1056 = vmatpush1.msra.mxu0 %v2133_v47 }
 0x848   :  { %1057 = vmatprep.subr.mxu0 %v2140_v48 }
 0x849   :  { %1058 = vmatpush1.msra.mxu0 %v2147_v49 }
 0x84a   :  { %1059 = vmatprep.subr.mxu0 %v2154_v50 }
 0x84b   :  { %1060 = vmatpush1.msra.mxu0 %v2161_v51 }
 0x84c   :  { %1061 = vmatprep.subr.mxu0 %v2168_v52 }
 0x84d   :  { %1062 = vmatpush1.msra.mxu0 %v2175_v53 }
 0x84e   :  { %1716 = vmatprep.subr.mxu0 %v1988_v1 }
 0x8fe   :  { %v855_v26 = vpop.f32.mrf.mxu0 }
 0x8ff   :  { %v856_v27 = vadd.f32 %v855_v26, %v2218_v58 }
 0x900   :  { %v857_v29 = vpop.f32.mrf.mxu0 }
 0x901   :  { %v866_v30 = vadd.f32 %v862_v28, %v856_v27  ;;  %v858_v32 = vadd.f32 %v857_v29, %v2222_v60  ;;  %v1102_v27 = vrot.slane %v2212_v55, 2  ;;  %v1026_v28 = vrot.slane %v2222_v60, 4 }
 0x903   :  { %v1690_v34 = vmul.f32 -1.442695, %v866_v30  ;;  %v867_v35 = vadd.f32 %v863_v33, %v858_v32  ;;  %v1103_v33 = vrot.slane %v2216_v57, 2 }
 0x905   :  { %1798 = vpow2.f32 %v1690_v34  ;;  %v1691_v37 = vmul.f32 -1.442695, %v867_v35 }
 0x907   :  { %1800 = vpow2.f32 %v1691_v37 }
 0x908   :  { %1802 = vtanh.f32 %v867_v35 }
 0x912   :  { %v1799_v40 = vpop.eup %1798 }
 0x913   :  { %v876_v62 = vadd.f32 1.0, %v1799_v40 }
 0x914   :  { %v1801_v43 = vpop.eup %1800 }
 0x915   :  { %v877_v63 = vadd.f32 1.0, %v1801_v43  ;;  %v1803_v2 = vpop.eup %1802 }
 0x917   :  { %1804 = vrcp.f32 %v877_v63 }
 0x918   :  { %1806 = vrcp.f32 %v876_v62 }
 0x924   :  { %v1805_v3 = vpop.eup %1804 }
 0x925   :  { %v1807_v4 = vpop.eup %1806  ;;  %v883_v5 = vsel %vm310_vm4, %v1803_v2, %v1805_v3 }
 0x926   :  { %v885_v6 = vmul.f32 %v1807_v4, %v883_v5  ;;  %v884_v7 = vmul.f32 %v1807_v4, %v773_v21 }
 0x928   :  { %887 = vrot.lane.b32.xlu0 %v885_v6, %s1989_s3 }
 0x99a   :  { %v888_v8 = vpop.permute.xlu0 %887 }
 0x99b   :  { %v890_v9 = vadd.f32 %v888_v8, %v884_v7 }
 0x99d   :  { %1808 = vtanh.f32 %v890_v9 }
 0x9aa   :  { %v1809_v10 = vpop.eup %1808 }
 0x9ab   :  { %v2357_v12 = vmul.f32 %v1809_v10, %v883_v5 }
 0x9ad   :  { %894 = vrot.lane.b32.xlu1 %v2357_v12, %s1989_s3 }
 0xa1f   :  { %v895_v14 = vpop.permute.xlu1 %894 }
 0xa20   :  { %898 = vst.msk [vmem:[#allocation2 + $0x8] sm:$0x3] %vm425_vm5, %v895_v14  ;;  %1692 = vmatmul.mubr.msk.f32.vlgmr.msra.gmra.mxu1 %vm313_vm6, %v895_v14 }
 0xa21   :  { %1167 = vmatpush1.msra.mxu1 %v2077_v36  ;;  %1214 = vmatprep.mubr.f32.mxu1 %v1988_v1  ;;  %v906_v36 = vrot.slane %v2218_v58, 2 }
 0xa22   :  { %1168 = vmatprep.subr.mxu1 %v2083_v38 }
 0xa23   :  { %1169 = vmatpush1.msra.mxu1 %v2090_v39 }
 0xa24   :  { %1170 = vmatprep.subr.mxu1 %v2097_v41  ;;  %v983_v41 = vrot.slane %v2212_v55, 4 }
 0xa25   :  { %1171 = vmatpush1.msra.mxu1 %v2105_v42  ;;  %v907_v42 = vrot.slane %v2222_v60, 2 }
 0xa26   :  { %1172 = vmatprep.subr.mxu1 %v2112_v44 }
 0xa27   :  { %1173 = vmatpush1.msra.mxu1 %v2120_v45 }
 0xa28   :  { %1174 = vmatprep.subr.mxu1 %v2127_v46 }
 0xa29   :  { %1175 = vmatpush1.msra.mxu1 %v2133_v47  ;;  %v984_v47 = vrot.slane %v2216_v57, 4 }
 0xa2a   :  { %1176 = vmatprep.subr.mxu1 %v2140_v48 }
 0xa2b   :  { %1177 = vmatpush1.msra.mxu1 %v2147_v49 }
 0xa2c   :  { %1178 = vmatprep.subr.mxu1 %v2154_v50 }
 0xa2d   :  { %1179 = vmatpush1.msra.mxu1 %v2161_v51 }
 0xa2e   :  { %1180 = vmatprep.subr.mxu1 %v2168_v52 }
 0xa2f   :  { %1181 = vmatpush1.msra.mxu1 %v2175_v53 }
 0xa30   :  { %1727 = vmatprep.subr.mxu1 %v1988_v1 }
 0xae0   :  { %v978_v38 = vpop.f32.mrf.mxu1 }
 0xae1   :  { %v979_v39 = vadd.f32 %v978_v38, %v906_v36 }
 0xae2   :  { %v980_v44 = vpop.f32.mrf.mxu1 }
 0xae3   :  { %v987_v45 = vadd.f32 %v983_v41, %v979_v39  ;;  %v981_v46 = vadd.f32 %v980_v44, %v907_v42  ;;  %v1145_v44 = vrot.slane %v2222_v60, 6 }
 0xae5   :  { %v1693_v48 = vmul.f32 -1.442695, %v987_v45  ;;  %v988_v49 = vadd.f32 %v984_v47, %v981_v46 }
 0xae7   :  { %1810 = vpow2.f32 %v1693_v48  ;;  %v1694_v50 = vmul.f32 -1.442695, %v988_v49 }
 0xae9   :  { %1812 = vpow2.f32 %v1694_v50 }
 0xaea   :  { %1814 = vtanh.f32 %v988_v49 }
 0xaf4   :  { %v1811_v51 = vpop.eup %1810 }
 0xaf5   :  { %v997_v53 = vadd.f32 1.0, %v1811_v51 }
 0xaf6   :  { %v1813_v52 = vpop.eup %1812 }
 0xaf7   :  { %v998_v15 = vadd.f32 1.0, %v1813_v52  ;;  %v1815_v16 = vpop.eup %1814 }
 0xaf9   :  { %1816 = vrcp.f32 %v998_v15 }
 0xafa   :  { %1818 = vrcp.f32 %v997_v53 }
 0xb06   :  { %v1817_v17 = vpop.eup %1816 }
 0xb07   :  { %v1819_v31 = vpop.eup %1818  ;;  %v1004_v54 = vsel %vm310_vm4, %v1815_v16, %v1817_v17 }
 0xb08   :  { %v1006_v18 = vmul.f32 %v1819_v31, %v1004_v54  ;;  %v1005_v56 = vmul.f32 %v1819_v31, %v890_v9 }
 0xb0a   :  { %1008 = vrot.lane.b32.xlu0 %v1006_v18, %s1989_s3 }
 0xb7c   :  { %v1009_v59 = vpop.permute.xlu0 %1008 }
 0xb7d   :  { %v1011_v19 = vadd.f32 %v1009_v59, %v1005_v56 }
 0xb7f   :  { %1820 = vtanh.f32 %v1011_v19 }
 0xb8c   :  { %v1821_v61 = vpop.eup %1820 }
 0xb8d   :  { %v2387_v20 = vmul.f32 %v1821_v61, %v1004_v54  ;;  %v1259_v61 = vld [vmem:[#allocation2 + $0x2] sm:$0x3] }
 0xb8f   :  { %1015 = vrot.lane.b32.xlu1 %v2387_v20, %s1989_s3 }
 0xc01   :  { %v1016_v21 = vpop.permute.xlu1 %1015 }
 0xc02   :  { %1019 = vst.msk [vmem:[#allocation2 + $0xa] sm:$0x3] %vm425_vm5, %v1016_v21  ;;  %1695 = vmatmul.mubr.msk.f32.vlgmr.msra.gmra.mxu0 %vm313_vm6, %v1016_v21  ;;  %v1262_v21 = vld [vmem:[#allocation2 + $0x8] sm:$0x3] }
 0xc03   :  { %1724 = vmatprep.mubr.msk.f32.mxu0 %vm1991_vm7, %v1988_v1 }
 0xcc2   :  { %v1097_v25 = vpop.f32.mrf.mxu0 }
 0xcc3   :  { %v1098_v26 = vadd.f32 %v1097_v25, %v1025_v22  ;;  %v1263_v22 = vld [vmem:[#allocation2 + $0xa] sm:$0x3] }
 0xcc4   :  { %v1099_v29 = vpop.f32.mrf.mxu0 }
 0xcc5   :  { %v1106_v30 = vadd.f32 %v1102_v27, %v1098_v26  ;;  %v1100_v32 = vadd.f32 %v1099_v29, %v1026_v28  ;;  %v2437_v27 = vld [vmem:[%s2601_s4] ss:$0 sm:$0xff] }
 0xcc7   :  { %v1696_v34 = vmul.f32 -1.442695, %v1106_v30  ;;  %v1107_v35 = vadd.f32 %v1103_v33, %v1100_v32 }
 0xcc9   :  { %1822 = vpow2.f32 %v1696_v34  ;;  %v1697_v37 = vmul.f32 -1.442695, %v1107_v35 }
 0xccb   :  { %1824 = vpow2.f32 %v1697_v37 }
 0xccc   :  { %1826 = vtanh.f32 %v1107_v35 }
 0xcd6   :  { %v1823_v40 = vpop.eup %1822 }
 0xcd7   :  { %v1116_v62 = vadd.f32 1.0, %v1823_v40 }
 0xcd8   :  { %v1825_v43 = vpop.eup %1824 }
 0xcd9   :  { %v1117_v63 = vadd.f32 1.0, %v1825_v43  ;;  %v1827_v2 = vpop.eup %1826 }
 0xcdb   :  { %1828 = vrcp.f32 %v1117_v63 }
 0xcdc   :  { %1830 = vrcp.f32 %v1116_v62 }
 0xce8   :  { %v1829_v3 = vpop.eup %1828 }
 0xce9   :  { %v1831_v4 = vpop.eup %1830  ;;  %v1123_v5 = vsel %vm310_vm4, %v1827_v2, %v1829_v3 }
 0xcea   :  { %v1125_v6 = vmul.f32 %v1831_v4, %v1123_v5  ;;  %v1124_v7 = vmul.f32 %v1831_v4, %v1011_v19  ;;  %v1260_v19 = vld [vmem:[#allocation2 + $0x4] sm:$0x3] }
 0xcec   :  { %1127 = vrot.lane.b32.xlu0 %v1125_v6, %s1989_s3 }
 0xd5e   :  { %v1128_v8 = vpop.permute.xlu0 %1127 }
 0xd5f   :  { %v1130_v9 = vadd.f32 %v1128_v8, %v1124_v7 }
 0xd61   :  { %1832 = vtanh.f32 %v1130_v9 }
 0xd6e   :  { %v1833_v10 = vpop.eup %1832 }
 0xd6f   :  { %v1132_v14 = vmul.f32 %v1833_v10, %v1123_v5 }
 0xd71   :  { %1134 = vrot.lane.b32.xlu1 %v1132_v14, %s1989_s3 }
 0xd75   :  { %427 = vrot.lane.b32.xlu1 %v2237_v23, %s1990_s13 }
 0xd79   :  { %667 = vrot.lane.b32.xlu1 %v2297_v0, %s1990_s13 }
 0xd7d   :  { %899 = vrot.lane.b32.xlu1 %v2357_v12, %s1990_s13  ;;  %v1144_v12 = vrot.slane %v2218_v58, 6 }
 0xd81   :  { %1139 = vrot.lane.b32.xlu1 %v1132_v14, %s1990_s13 }
 0xde3   :  { %v1135_v36 = vpop.permute.xlu1 %1134 }
 0xde4   :  { %1138 = vst.msk [vmem:[#allocation2 + $0xc] sm:$0x3] %vm425_vm5, %v1135_v36  ;;  %1698 = vmatmul.mubr.msk.f32.vlgmr.msra.gmra.mxu1 %vm313_vm6, %v1135_v36 }
 0xde5   :  { %1735 = vmatprep.mubr.msk.f32.mxu1 %vm1991_vm7, %v1988_v1 }
 0xde7   :  { %v428_v38 = vpop.permute.xlu1 %427 }
 0xde8   :  { %431 = vst.msk [vmem:[#allocation3 + $0xe] sm:$0x3] %vm425_vm5, %v428_v38 }
 0xdeb   :  { %v668_v39 = vpop.permute.xlu1 %667  ;;  %v1264_v25 = vld [vmem:[#allocation2 + $0xc] sm:$0x3] }
 0xdec   :  { %671 = vst.msk [vmem:[#allocation3 + $0xa] sm:$0x3] %vm425_vm5, %v668_v39 }
 0xdef   :  { %v900_v23 = vpop.permute.xlu1 %899 }
 0xdf0   :  { %903 = vst.msk [vmem:[#allocation3 + $0x6] sm:$0x3] %vm425_vm5, %v900_v23  ;;  %v1702_v23 = vld [vmem:[%s2602_s5] ss:$0 sm:$0xff] }
 0xdf3   :  { %v1140_v0 = vpop.permute.xlu1 %1139  ;;  %v1279_v63 = vld [vmem:[#allocation3 + $0xa] sm:$0x3] }
 0xdf4   :  { %1143 = vst.msk [vmem:[#allocation3 + $0x2] sm:$0x3] %vm425_vm5, %v1140_v0 }
 0xdf7   :  { %v1277_v33 = vld [vmem:[#allocation3 + $0x6] sm:$0x3] }
 0xdfb   :  { %v1275_v28 = vld [vmem:[#allocation3 + $0x2] sm:$0x3] }
 0xea4   :  { %v1216_v41 = vpop.f32.mrf.mxu1 }
 0xea5   :  { %v1217_v42 = vadd.f32 %v1216_v41, %v1144_v12 }
 0xea6   :  { %v1218_v45 = vpop.f32.mrf.mxu1 }
 0xea7   :  { %v1221_v46 = vadd.f32 %v1217_v42, %v2212_v55  ;;  %v1219_v47 = vadd.f32 %v1218_v45, %v1145_v44 }
 0xea9   :  { %v1699_v48 = vmul.f32 -1.442695, %v1221_v46  ;;  %v1222_v49 = vadd.f32 %v1219_v47, %v2216_v57 }
 0xeab   :  { %1834 = vpow2.f32 %v1699_v48  ;;  %v1700_v50 = vmul.f32 -1.442695, %v1222_v49 }
 0xead   :  { %1836 = vpow2.f32 %v1700_v50 }
 0xeae   :  { %1838 = vtanh.f32 %v1222_v49 }
 0xeb8   :  { %v1835_v51 = vpop.eup %1834 }
 0xeb9   :  { %v1231_v53 = vadd.f32 1.0, %v1835_v51 }
 0xeba   :  { %v1837_v52 = vpop.eup %1836 }
 0xebb   :  { %v1232_v15 = vadd.f32 1.0, %v1837_v52  ;;  %v1839_v58 = vpop.eup %1838 }
 0xebd   :  { %1840 = vrcp.f32 %v1232_v15 }
 0xebe   :  { %1842 = vrcp.f32 %v1231_v53 }
 0xeca   :  { %v1841_v16 = vpop.eup %1840 }
 0xecb   :  { %v1843_v60 = vpop.eup %1842  ;;  %v1238_v55 = vsel %vm310_vm4, %v1839_v58, %v1841_v16 }
 0xecc   :  { %v1240_v17 = vmul.f32 %v1843_v60, %v1238_v55  ;;  %v1239_v57 = vmul.f32 %v1843_v60, %v1130_v9  ;;  %v1281_v60 = vld [vmem:[#allocation3 + $0xe] sm:$0x3] }
 0xece   :  { %1242 = vrot.lane.b32.xlu0 %v1240_v17, %s1989_s3 }
 0xed2   :  { %548 = vrot.lane.b32.xlu0 %v2267_v11, %s1990_s13 }
 0xed6   :  { %782 = vrot.lane.b32.xlu0 %v2327_v24, %s1990_s13  ;;  %v1258_v24 = vld [vmem:[#allocation2] sm:$0x3] }
 0xeda   :  { %1020 = vrot.lane.b32.xlu0 %v2387_v20, %s1990_s13  ;;  %v1261_v20 = vld [vmem:[#allocation2 + $0x6] sm:$0x3] }
 0xf40   :  { %v1243_v31 = vpop.permute.xlu0 %1242 }
 0xf41   :  { %v1245_v54 = vadd.f32 %v1243_v31, %v1239_v57 }
 0xf43   :  { %1844 = vtanh.f32 %v1245_v54 }
 0xf44   :  { %v549_v18 = vpop.permute.xlu0 %548  ;;  %1846 = vtanh.f32 %v1258_v24 }
 0xf45   :  { %552 = vst.msk [vmem:[#allocation3 + $0xc] sm:$0x3] %vm425_vm5, %v549_v18  ;;  %1848 = vtanh.f32 %v1260_v19 }
 0xf46   :  { %1850 = vtanh.f32 %v1259_v61 }
 0xf47   :  { %1852 = vtanh.f32 %v1261_v20 }
 0xf48   :  { %v783_v13 = vpop.permute.xlu0 %782  ;;  %1854 = vtanh.f32 %v1262_v21 }
 0xf49   :  { %786 = vst.msk [vmem:[#allocation3 + $0x8] sm:$0x3] %vm425_vm5, %v783_v13  ;;  %1856 = vtanh.f32 %v1263_v22  ;;  %v1494_v22 = vld [vmem:[%s2604_s7 + $0x18] sm:$0xff] }
 0xf4a   :  { %1858 = vtanh.f32 %v1264_v25  ;;  %v1490_v25 = vld [vmem:[%s2603_s6 + $0x18] sm:$0xff]  ;;  %1717 = vmatpush3.msra.mxu0 %v1494_v22 }
 0xf4b   :  { %1860 = vtanh.f32 %v1275_v28  ;;  %1728 = vmatpush3.msra.mxu1 %v1490_v25  ;;  %v1489_v28 = vld [vmem:[%s2603_s6 + $0x10] sm:$0xff]  ;;  %1718 = vmatprep.subr.mxu0 %v1988_v1 }
 0xf4c   :  { %v1021_v56 = vpop.permute.xlu0 %1020  ;;  %1729 = vmatprep.subr.mxu1 %v1988_v1 }
 0xf4d   :  { %1024 = vst.msk [vmem:[#allocation3 + $0x4] sm:$0x3] %vm425_vm5, %v1021_v56  ;;  %1730 = vmatpush3.msra.mxu1 %v1489_v28 }
 0xf4e   :  { %1731 = vmatprep.subr.mxu1 %v1988_v1 }
 0xf50   :  { %v1845_v11 = vpop.eup %1844  ;;  %v1278_v35 = vld [vmem:[#allocation3 + $0x8] sm:$0x3] }
 0xf51   :  { %v1247_v59 = vmul.f32 %v1845_v11, %v1238_v55  ;;  %v2432_v26 = vpop.eup %1846  ;;  %v1280_v55 = vld [vmem:[#allocation3 + $0xc] sm:$0x3] }
 0xf52   :  { %v1298_v30 = vmul.f32 %v2432_v26, %v2437_v27  ;;  %v2441_v32 = vpop.eup %1848 }
 0xf53   :  { %1254 = vrot.lane.b32.xlu1 %v1247_v59, %s1990_s13  ;;  %1249 = vrot.lane.b32.xlu0 %v1247_v59, %s1989_s3  ;;  %v2443_v34 = vpop.eup %1850  ;;  %v1300_v40 = vmul.f32 %v2441_v32, %v2437_v27 }
 0xf54   :  { %v1276_v29 = vld [vmem:[#allocation3 + $0x4] sm:$0x3]  ;;  %v1306_v37 = vsel %vm425_vm5, %v1298_v30, 0.0  ;;  %v2448_v43 = vpop.eup %1852  ;;  %v1299_v62 = vmul.f32 %v2443_v34, %v2437_v27  ;;  %v1488_v30 = vld [vmem:[%s2603_s6 + $0x8] sm:$0xff] }
 0xf55   :  { %1862 = vtanh.f32 %v1276_v29  ;;  %v2452_v2 = vpop.eup %1854  ;;  %v1312_v3 = vsel %vm425_vm5, %v1300_v40, 0.0  ;;  %v1301_v4 = vmul.f32 %v2448_v43, %v2437_v27  ;;  %v1492_v29 = vld [vmem:[%s2604_s7 + $0x8] sm:$0xff]  ;;  %1732 = vmatpush3.msra.mxu1 %v1488_v30 }
 0xf56   :  { %1864 = vtanh.f32 %v1277_v33  ;;  %v2457_v5 = vpop.eup %1856  ;;  %v1309_v6 = vsel %vm425_vm5, %v1299_v62, 0.0  ;;  %v1302_v7 = vmul.f32 %v2452_v2, %v2437_v27  ;;  %v1491_v33 = vld [vmem:[%s2604_s7] sm:$0xff]  ;;  %1733 = vmatprep.subr.mxu1 %v1988_v1 }
 0xf57   :  { %1866 = vtanh.f32 %v1278_v35  ;;  %v2462_v8 = vpop.eup %1858  ;;  %v1315_v9 = vsel %vm425_vm5, %v1301_v4, 0.0  ;;  %v1303_v10 = vmul.f32 %v2457_v5, %v2437_v27  ;;  %v1487_v35 = vld [vmem:[%s2603_s6] sm:$0xff]  ;;  %s1992_s6 = smov [#allocation10]  }
 0xf58   :  { %1868 = vtanh.f32 %v1279_v63  ;;  %v2467_v14 = vpop.eup %1860  ;;  %v1318_v36 = vsel %vm425_vm5, %v1302_v7, 0.0  ;;  %v1304_v38 = vmul.f32 %v2462_v8, %v2437_v27  ;;  %1734 = vmatpush3.msra.mxu1 %v1487_v35 }
 0xf59   :  { %v1321_v0 = vsel %vm425_vm5, %v1303_v10, 0.0  ;;  %v1337_v12 = vmul.f32 %v2467_v14, %v1702_v23  ;;  %1870 = vtanh.f32 %v1281_v60 }
 0xf5a   :  { %v1324_v42 = vsel %vm425_vm5, %v1304_v38, 0.0  ;;  %1872 = vtanh.f32 %v1280_v55 }
 0xf5b   :  { %v1347_v46 = vsel %vm425_vm5, %v1337_v12, 0.0 }
 0xf62   :  { %v2472_v39 = vpop.eup %1862 }
 0xf63   :  { %v2479_v41 = vpop.eup %1864  ;;  %v1338_v44 = vmul.f32 %v2472_v39, %v1702_v23 }
 0xf64   :  { %v2483_v45 = vpop.eup %1866  ;;  %v1339_v47 = vmul.f32 %v2479_v41, %v1702_v23 }
 0xf65   :  { %v2487_v48 = vpop.eup %1868  ;;  %v1350_v49 = vsel %vm425_vm5, %v1338_v44, 0.0  ;;  %v1340_v50 = vmul.f32 %v2483_v45, %v1702_v23 }
 0xf66   :  { %v1353_v51 = vsel %vm425_vm5, %v1339_v47, 0.0  ;;  %v1341_v52 = vmul.f32 %v2487_v48, %v1702_v23  ;;  %v2497_v31 = vpop.eup %1870 }
 0xf67   :  { %v1356_v53 = vsel %vm425_vm5, %v1340_v50, 0.0  ;;  %v2499_v54 = vpop.eup %1872  ;;  %v1343_v61 = vmul.f32 %v2497_v31, %v1702_v23 }
 0xf68   :  { %v1359_v15 = vsel %vm425_vm5, %v1341_v52, 0.0  ;;  %v1342_v24 = vmul.f32 %v2499_v54, %v1702_v23 }
 0xf69   :  { %v1365_v21 = vsel %vm425_vm5, %v1343_v61, 0.0 }
 0xf6a   :  { %v1362_v20 = vsel %vm425_vm5, %v1342_v24, 0.0 }
 0xf72   :  { %1307 = vadd.xlane.f32.xlu0 %v1306_v37 }
 0xf76   :  { %1313 = vadd.xlane.f32.xlu0 %v1312_v3 }
 0xf77   :  { %1310 = vadd.xlane.f32.xlu1 %v1309_v6 }
 0xf7a   :  { %1316 = vadd.xlane.f32.xlu0 %v1315_v9 }
 0xf7b   :  { %1319 = vadd.xlane.f32.xlu1 %v1318_v36 }
 0xf7e   :  { %1322 = vadd.xlane.f32.xlu0 %v1321_v0 }
 0xf7f   :  { %1325 = vadd.xlane.f32.xlu1 %v1324_v42 }
 0xf82   :  { %1348 = vadd.xlane.f32.xlu0 %v1347_v46 }
 0xf83   :  { %1351 = vadd.xlane.f32.xlu1 %v1350_v49 }
 0xf86   :  { %1354 = vadd.xlane.f32.xlu0 %v1353_v51 }
 0xf87   :  { %1357 = vadd.xlane.f32.xlu1 %v1356_v53 }
 0xf8a   :  { %1360 = vadd.xlane.f32.xlu0 %v1359_v15 }
 0xfc5   :  { %v1250_v58 = vpop.permute.xlu0 %1249  ;;  %v1255_v16 = vpop.permute.xlu1 %1254 }
 0xfc6   :  { %1253 = vst.msk [vmem:[#allocation2 + $0xe] sm:$0x3] %vm425_vm5, %v1250_v58  ;;  %1257 = vst.msk [vmem:[#allocation3] sm:$0x3] %vm425_vm5, %v1255_v16 }
 0xfcd   :  { %v1274_v17 = vld [vmem:[#allocation3] sm:$0x3]  ;;  %v1265_v57 = vld [vmem:[#allocation2 + $0xe] sm:$0x3] }
 0xfce   :  { %1874 = vtanh.f32 %v1274_v17 }
 0xfcf   :  { %1876 = vtanh.f32 %v1265_v57 }
 0xfdb   :  { %v2501_v18 = vpop.eup %1874 }
 0xfdc   :  { %v2503_v13 = vpop.eup %1876  ;;  %v1336_v56 = vmul.f32 %v2501_v18, %v1702_v23 }
 0xfdd   :  { %v1305_v11 = vmul.f32 %v2503_v13, %v2437_v27  ;;  %v1493_v27 = vld [vmem:[%s2604_s7 + $0x10] sm:$0xff]  ;;  %s1658_s7 = sshll.u32 %s1992_s6, 4  ;;  %s1659_s7 = int_to_ptr.vmem [resolvable:$true] %s1658_s7 }
 0xfde   :  { %v1344_v59 = vsel %vm425_vm5, %v1336_v56, 0.0  ;;  %1719 = vmatpush3.msra.mxu0 %v1493_v27  ;;  %s1956_s8 = scalar_lea.vmem %s1659_s7, 32  ;;  %p1961_p2 = scmp.lt.s32.totalorder %s1659_s7, %s1659_s7 }
 0xfdf   :  { %1345 = vadd.xlane.f32.xlu1 %v1344_v59  ;;  %v1327_v19 = vsel %vm425_vm5, %v1305_v11, 0.0  ;;  %1720 = vmatprep.subr.mxu0 %v1988_v1  ;;  %p1957_p1 = scmp.ne.s32.totalorder %s1659_s7, %s1956_s8  ;;  %p1962_p3 = scmp.lt.s32.totalorder %s1956_s8, %s1956_s8 }
 0xfe0   :  { %1328 = vadd.xlane.f32.xlu0 %v1327_v19  ;;  %1721 = vmatpush3.msra.mxu0 %v1492_v29 }
 0xfe1   :  { %1722 = vmatprep.subr.mxu0 %v1988_v1  ;;  %p1963_p4 = por %p1962_p3, %p1961_p2 }
 0xfe2   :  { %1723 = vmatpush3.msra.mxu0 %v1491_v33 }
 0xfe3   :  { %1363 = vadd.xlane.f32.xlu1 %v1362_v20  ;;  %p1964_p5 = pnand %p1963_p4, %p1957_p1 }
 0xfe4   :  { %1366 = vadd.xlane.f32.xlu0 %v1365_v21 }
 0xffb   :  { %v1308_v37 = vpop.xlane.xlu0 %1307 }
 0xfff   :  { %v1314_v40 = vpop.xlane.xlu0 %1313 }
0x1000   :  { %v1311_v62 = vpop.xlane.xlu1 %1310 }
0x1003   :  { %v1317_v63 = vpop.xlane.xlu0 %1316 }
0x1004   :  { %v1320_v3 = vpop.xlane.xlu1 %1319 }
0x1007   :  { %v1323_v4 = vpop.xlane.xlu0 %1322 }
0x1008   :  { %v1326_v6 = vpop.xlane.xlu1 %1325 }
0x100b   :  { %v1349_v7 = vpop.xlane.xlu0 %1348 }
0x100c   :  { %v1352_v9 = vpop.xlane.xlu1 %1351  ;;  %v1369_v47 = vadd.f32 %v1349_v7, %v1311_v62 }
0x100d   :  { %v1370_v46 = vadd.f32 %v1352_v9, %v1314_v40 }
0x100e   :  { %v1377_v17 = vsel %vm109_vm0, %v1369_v47, -inf }
0x100f   :  { %v1355_v10 = vpop.xlane.xlu0 %1354  ;;  %v1378_v16 = vsel %vm109_vm0, %v1370_v46, -inf }
0x1010   :  { %v1358_v36 = vpop.xlane.xlu1 %1357  ;;  %v1371_v1 = vadd.f32 %v1355_v10, %v1317_v63 }
0x1011   :  { %v1372_v42 = vadd.f32 %v1358_v36, %v1320_v3 }
0x1012   :  { %v1379_v57 = vsel %vm109_vm0, %v1371_v1, -inf }
0x1013   :  { %v1361_v38 = vpop.xlane.xlu0 %1360  ;;  %v1380_v53 = vsel %vm109_vm0, %v1372_v42, -inf }
0x1014   :  { %v1373_v44 = vadd.f32 %v1361_v38, %v1323_v4 }
0x1016   :  { %v1382_v15 = vsel %vm109_vm0, %v1373_v44, -inf }
0x1017   :  { %v1383_v59 = vmax.f32 %v1377_v17, %v1382_v15 }
0x1068   :  { %v1346_v23 = vpop.xlane.xlu1 %1345 }
0x1069   :  { %v1368_v0 = vadd.f32 %v1346_v23, %v1308_v37  ;;  %v1329_v12 = vpop.xlane.xlu0 %1328 }
0x106b   :  { %v1376_v49 = vsel %vm109_vm0, %v1368_v0, -inf }
0x106c   :  { %v1364_v50 = vpop.xlane.xlu1 %1363  ;;  %v1381_v60 = vmax.f32 %v1376_v49, %v1380_v53 }
0x106d   :  { %v1374_v51 = vadd.f32 %v1364_v50, %v1326_v6  ;;  %v1367_v52 = vpop.xlane.xlu0 %1366 }
0x106e   :  { %v1375_v58 = vadd.f32 %v1367_v52, %v1329_v12  ;;  %v1388_v19 = vmax.f32 %v1381_v60, %v1383_v59 }
0x106f   :  { %v1384_v55 = vsel %vm109_vm0, %v1374_v51, -inf }
0x1070   :  { %v1385_v56 = vmax.f32 %v1378_v16, %v1384_v55  ;;  %v1386_v11 = vsel %vm109_vm0, %v1375_v58, -inf }
0x1071   :  { %v1387_v24 = vmax.f32 %v1379_v57, %v1386_v11 }
0x1073   :  { %v1389_v61 = vmax.f32 %v1385_v56, %v1387_v24 }
0x1075   :  { %v1390_v20 = vmax.f32 %v1388_v19, %v1389_v61 }
0x1077   :  { %v1391_v21 = vsub.f32 %v1368_v0, %v1390_v20  ;;  %v1392_v22 = vsub.f32 %v1369_v47, %v1390_v20  ;;  %v1393_v25 = vsub.f32 %v1370_v46, %v1390_v20  ;;  %v1394_v27 = vsub.f32 %v1371_v1, %v1390_v20 }
0x1078   :  { %v1395_v28 = vsub.f32 %v1372_v42, %v1390_v20  ;;  %v1396_v35 = vsub.f32 %v1373_v44, %v1390_v20  ;;  %v1397_v40 = vsub.f32 %v1374_v51, %v1390_v20  ;;  %v1398_v63 = vsub.f32 %v1375_v58, %v1390_v20 }
0x1079   :  { %v1399_v29 = vmul.f32 1.442695, %v1391_v21  ;;  %v1401_v30 = vmul.f32 1.442695, %v1392_v22  ;;  %v1403_v33 = vmul.f32 1.442695, %v1393_v25 }
0x107a   :  { %v1405_v37 = vmul.f32 1.442695, %v1394_v27  ;;  %v1407_v62 = vmul.f32 1.442695, %v1395_v28  ;;  %v1409_v3 = vmul.f32 1.442695, %v1396_v35 }
0x107b   :  { %1878 = vpow2.f32 %v1399_v29  ;;  %v1411_v4 = vmul.f32 1.442695, %v1397_v40  ;;  %v1413_v6 = vmul.f32 1.442695, %v1398_v63 }
0x107c   :  { %1880 = vpow2.f32 %v1401_v30 }
0x107d   :  { %1882 = vpow2.f32 %v1403_v33 }
0x107e   :  { %1884 = vpow2.f32 %v1405_v37 }
0x107f   :  { %1886 = vpow2.f32 %v1407_v62 }
0x1080   :  { %1888 = vpow2.f32 %v1409_v3 }
0x1081   :  { %1890 = vpow2.f32 %v1411_v4 }
0x1082   :  { %1892 = vpow2.f32 %v1413_v6 }
0x1088   :  { %v1879_v7 = vpop.eup %1878 }
0x1089   :  { %v1881_v9 = vpop.eup %1880  ;;  %v1415_v10 = vsel %vm109_vm0, %v1879_v7, 0.0 }
0x108a   :  { %v1883_v36 = vpop.eup %1882  ;;  %v1416_v38 = vsel %vm109_vm0, %v1881_v9, 0.0 }
0x108b   :  { %v1885_v23 = vpop.eup %1884  ;;  %v1417_v0 = vadd.f32 %v1416_v38, %v1415_v10  ;;  %v1418_v12 = vsel %vm109_vm0, %v1883_v36, 0.0 }
0x108c   :  { %v1887_v42 = vpop.eup %1886  ;;  %v1420_v46 = vsel %vm109_vm0, %v1885_v23, 0.0 }
0x108d   :  { %v1419_v44 = vadd.f32 %v1418_v12, %v1417_v0  ;;  %v1889_v47 = vpop.eup %1888  ;;  %v1422_v49 = vsel %vm109_vm0, %v1887_v42, 0.0 }
0x108e   :  { %v1891_v50 = vpop.eup %1890  ;;  %v1424_v52 = vsel %vm109_vm0, %v1889_v47, 0.0 }
0x108f   :  { %v1421_v1 = vadd.f32 %v1420_v46, %v1419_v44  ;;  %v1893_v53 = vpop.eup %1892  ;;  %v1426_v58 = vsel %vm109_vm0, %v1891_v50, 0.0 }
0x1090   :  { %v1428_v60 = vsel %vm109_vm0, %v1893_v53, 0.0 }
0x1091   :  { %v1423_v51 = vadd.f32 %v1422_v49, %v1421_v1 }
0x1093   :  { %v1425_v15 = vadd.f32 %v1424_v52, %v1423_v51 }
0x1095   :  { %v1427_v16 = vadd.f32 %v1426_v58, %v1425_v15 }
0x1097   :  { %v1429_v55 = vadd.f32 %v1428_v60, %v1427_v16  ;;  %v1705_v16 = vld [vmem:[#allocation9] ss:$0 sm:$0xff] }
0x1099   :  { %1894 = vrcp.f32 %v1429_v55 }
0x10a6   :  { %v1895_v17 = vpop.eup %1894 }
0x10a7   :  { %v1431_v57 = vmul.f32 %v1895_v17, %v1879_v7  ;;  %v1432_v56 = vmul.f32 %v1895_v17, %v1881_v9  ;;  %v1433_v11 = vmul.f32 %v1895_v17, %v1883_v36  ;;  %v1434_v59 = vmul.f32 %v1895_v17, %v1885_v23 }
0x10a8   :  { %v1435_v24 = vmul.f32 %v1895_v17, %v1887_v42  ;;  %v1436_v21 = vmul.f32 %v1895_v17, %v1889_v47  ;;  %v1437_v28 = vmul.f32 %v1895_v17, %v1891_v50 }
0x10a9   :  { %v1463_v19 = vmul.f32 %v2501_v18, %v1431_v57  ;;  %v1464_v61 = vmul.f32 %v2467_v14, %v1432_v56  ;;  %v1465_v20 = vmul.f32 %v2472_v39, %v1433_v11  ;;  %v1466_v22 = vmul.f32 %v2479_v41, %v1434_v59 }
0x10aa   :  { %v1467_v29 = vmul.f32 %v2483_v45, %v1435_v24  ;;  %v1439_v35 = vmul.f32 %v2432_v26, %v1431_v57  ;;  %v1440_v18 = vmul.f32 %v2443_v34, %v1432_v56  ;;  %v1441_v14 = vmul.f32 %v2441_v32, %v1433_v11 }
0x10ab   :  { %v1471_v25 = vsel %vm425_vm5, %v1463_v19, 0.0  ;;  %v1472_v27 = vsel %vm425_vm5, %v1464_v61, 0.0  ;;  %v1474_v33 = vsel %vm425_vm5, %v1465_v20, 0.0  ;;  %v1438_v39 = vmul.f32 %v1895_v17, %v1893_v53 }
0x10ac   :  { %v1473_v30 = vadd.f32 %v1472_v27, %v1471_v25  ;;  %v1468_v37 = vmul.f32 %v2487_v48, %v1436_v21  ;;  %v1476_v40 = vsel %vm425_vm5, %v1466_v22, 0.0  ;;  %v1442_v62 = vmul.f32 %v2448_v43, %v1434_v59 }
0x10ad   :  { %v1447_v63 = vsel %vm425_vm5, %v1439_v35, 0.0  ;;  %v1448_v45 = vsel %vm425_vm5, %v1440_v18, 0.0  ;;  %v1469_v26 = vmul.f32 %v2499_v54, %v1437_v28  ;;  %v1478_v34 = vsel %vm425_vm5, %v1467_v29, 0.0 }
0x10ae   :  { %v1475_v41 = vadd.f32 %v1474_v33, %v1473_v30  ;;  %v1449_v4 = vadd.f32 %v1448_v45, %v1447_v63  ;;  %v1443_v32 = vmul.f32 %v2452_v2, %v1435_v24  ;;  %v1450_v6 = vsel %vm425_vm5, %v1441_v14, 0.0 }
0x10af   :  { %v1470_v9 = vmul.f32 %v2497_v31, %v1438_v39  ;;  %v1480_v43 = vsel %vm425_vm5, %v1468_v37, 0.0  ;;  %v1444_v10 = vmul.f32 %v2457_v5, %v1436_v21  ;;  %v1452_v36 = vsel %vm425_vm5, %v1442_v62, 0.0 }
0x10b0   :  { %v1477_v3 = vadd.f32 %v1476_v40, %v1475_v41  ;;  %v1451_v7 = vadd.f32 %v1450_v6, %v1449_v4  ;;  %v1482_v54 = vsel %vm425_vm5, %v1469_v26, 0.0  ;;  %v1445_v0 = vmul.f32 %v2462_v8, %v1437_v28 }
0x10b1   :  { %v1454_v2 = vsel %vm425_vm5, %v1443_v32, 0.0  ;;  %v1484_v44 = vsel %vm425_vm5, %v1470_v9, 0.0  ;;  %v1446_v31 = vmul.f32 %v2503_v13, %v1438_v39  ;;  %v1456_v46 = vsel %vm425_vm5, %v1444_v10, 0.0 }
0x10b2   :  { %v1479_v48 = vadd.f32 %v1478_v34, %v1477_v3  ;;  %v1453_v23 = vadd.f32 %v1452_v36, %v1451_v7  ;;  %v1458_v1 = vsel %vm425_vm5, %v1445_v0, 0.0 }
0x10b3   :  { %v1460_v51 = vsel %vm425_vm5, %v1446_v31, 0.0 }
0x10b4   :  { %v1481_v38 = vadd.f32 %v1480_v43, %v1479_v48  ;;  %v1455_v42 = vadd.f32 %v1454_v2, %v1453_v23 }
0x10b6   :  { %v1483_v12 = vadd.f32 %v1482_v54, %v1481_v38  ;;  %v1457_v5 = vadd.f32 %v1456_v46, %v1455_v42 }
0x10b8   :  { %v1485_v47 = vadd.f32 %v1484_v44, %v1483_v12  ;;  %v1459_v50 = vadd.f32 %v1458_v1, %v1457_v5 }
0x10ba   :  { %v1486_v49 = vmax.f32 %v1485_v47, 0.0  ;;  %v1461_v8 = vadd.f32 %v1460_v51, %v1459_v50 }
0x10bc   :  { %1725 = vmatmul.mubr.msk.f32.vlgmr.msra.gmra.mxu0 %vm1495_vm8, %v1486_v49  ;;  %v1462_v52 = vmax.f32 %v1461_v8, 0.0 }
0x10be   :  { %1736 = vmatmul.mubr.msk.f32.vlgmr.msra.gmra.mxu1 %vm1495_vm8, %v1462_v52 }
0x117c   :  { %v1565_v53 = vpop.f32.mrf.mxu0 }
0x117e   :  { %v1726_v15 = vpop.f32.mrf.mxu0  ;;  %v1638_v58 = vpop.f32.mrf.mxu1 }
0x117f   :  { %v1639_v13 = vadd.f32 %v1638_v58, %v1565_v53 }
0x1180   :  { %v1737_v60 = vpop.f32.mrf.mxu1 }
0x1181   :  { %v1649_v55 = vadd.f32 %v1705_v16, %v1639_v13 }
0x1183   :  { %1651 = vst.msk [vmem:[#allocation10] sm:$0x3] %vm1650_vm9, %v1649_v55 }
0x1184   :  { %1967 = shalt.err (!%p1964_p5)
}
0x1185   :  { %1661 = dma.vmem_to_hbm [thread:$0]  %s1659_s7, 32, %s2606_s9, [#allocation6]  }
0x1186   :  { %1980 = dma.done.wait [#allocation6], 32  }
0x1187   :  { %1981 = vsyncadd [#allocation6], 4294967264 }
0x1188   :  { %1665 = vsyncpa [#allocation5], 1 }
0x1189   :  { %1666 = vsyncpa [#allocation8], 1 }
0x118a   :  { %1667 = vsyncpa [#allocation6], 1 }

</bundles_post_ra>
